<compile_context>
chip_gen: v5e
topology: v5e:2x2
jax: 0.10.0
libtpu: 0.0.40
codegen_flags: <defaults>
</compile_context>

<pallas_src>
import jax
import jax.numpy as jnp
import numpy as np
from jax import lax
from jax.experimental import pallas as pl
from jax.experimental.pallas import tpu as pltpu

RMS_EPS = 1e-6
LANE = 128  # lane width: x_proj segment stride and padded output width


def _silu(x):
    return x * jax.nn.sigmoid(x)


def _softplus(x):
    # torch.nn.functional.softplus with beta=1, threshold=20
    return jnp.where(x > 20.0, x, jnp.log1p(jnp.exp(jnp.minimum(x, 20.0))))


def _rmsnorm(x, w):
    var = jnp.mean(x * x, axis=-1, keepdims=True)
    return x * lax.rsqrt(var + RMS_EPS) * w


def mamba_mixer_kernel(
    x_ref,        # (1, L, H)   f32   current batch element
    w_in_ref,     # (H, 2I)     bf16  fused in_proj [hidden | gate]
    w_conv_ref,   # (K, I)      f32   depthwise conv weight (= conv1d.weight[:,0,:].T)
    b_conv_ref,   # (1, I)      f32
    w_xp_ref,     # (I, 3*LANE) bf16  fused x_proj, [dt | B | C] on 128-lane segments
    dtln_ref,     # (1, R)      f32   dt_layernorm weight
    bln_ref,      # (1, N)      f32   b_layernorm weight
    cln_ref,      # (1, N)      f32   c_layernorm weight
    w_dtp_ref,    # (R, I)      f32   dt_proj weight (R tiny -> VPU FMA, no MXU)
    b_dtp_ref,    # (1, I)      f32   dt_proj bias
    A_T_ref,      # (N, I)      f32   precomputed -exp(A_log).T
    D_ref,        # (1, I)      f32
    w_out_ref,    # (I, HP)     bf16  out_proj, zero-padded to HP=128 lanes
    o_ref,        # (1, L, HP)  f32
):
    _, L, _H = x_ref.shape
    K, I = w_conv_ref.shape
    R = dtln_ref.shape[1]
    N = bln_ref.shape[1]
    SEG = w_xp_ref.shape[1] // 3
    f32 = jnp.float32
    bf16 = jnp.bfloat16

    xb = x_ref[0].astype(bf16)                                  # (L, H)

    # ---- fused in_proj: single MXU pass, lane-dense (L, 2I) output ----------
    proj_in = jnp.dot(xb, w_in_ref[...], preferred_element_type=f32)   # (L, 2I)
    hs = proj_in[:, :I]                                         # (L, I) f32
    gate = proj_in[:, I:]                                       # (L, I) f32

    # ---- causal depthwise conv: shifted register copies, no VMEM scratch ----
    wc = w_conv_ref[...]                                        # (K, I)
    conv = hs * wc[K - 1 : K, :]                                # shift d = 0
    for d in range(1, K):                                       # K tiny & static
        shifted = jnp.concatenate(
            [jnp.zeros((d, I), f32), hs[: L - d, :]], axis=0)   # (L, I)
        conv = conv + shifted * wc[K - 1 - d : K - d, :]
    u = _silu(conv + b_conv_ref[...])                           # (L, I) f32

    # ---- fused x_proj: dt/B/C splits land on 128-lane boundaries ------------
    proj = jnp.dot(u.astype(bf16), w_xp_ref[...], preferred_element_type=f32)
    ts = _rmsnorm(proj[:, :R], dtln_ref[...])                   # (L, R)
    Bm = _rmsnorm(proj[:, SEG : SEG + N], bln_ref[...])         # (L, N)
    Cm = _rmsnorm(proj[:, 2 * SEG : 2 * SEG + N], cln_ref[...]) # (L, N)

    # ---- dt_proj: contraction depth R=2 -> VPU broadcast-FMA in f32 ---------
    dts = b_dtp_ref[...]                                        # (1, I)
    w_dtp = w_dtp_ref[...]                                      # (R, I)
    for r in range(R):
        dts = dts + ts[:, r : r + 1] * w_dtp[r : r + 1, :]
    dt = _softplus(dts)                                         # (L, I)

    # ---- (L, N) -> (N, L) relayout for B, C (iota mask + lane reduce) -------
    # TODO(synk): switch to pltpu.einshape("ln->nl", ...) once verified on
    # sub-(8,128) tiles; at (8,16) this masked relayout is ~2K VPU flops.
    sel = (lax.broadcasted_iota(jnp.int32, (N, 1, N), 0)
           == lax.broadcasted_iota(jnp.int32, (N, 1, N), 2)).astype(f32)
    BmT = jnp.sum(sel * Bm[None, :, :], axis=2)                 # (N, L)
    CmT = jnp.sum(sel * Cm[None, :, :], axis=2)                 # (N, L)

    # ---- discretization: one batched exp for all L steps (keeps EUP full) ---
    A_T = A_T_ref[...]                                          # (N, I)
    dA_all = jnp.exp(
        jnp.concatenate([A_T * dt[t : t + 1, :] for t in range(L)], axis=0)
    )                                                           # (L*N, I)
    dtu = dt * u                                                # (L, I)

    # ---- selective scan: state (N, I) f32, per-step outputs stay in regs ----
    state = jnp.zeros((N, I), f32)
    ys = []
    for t in range(L):                                          # L small & static
        b_t = BmT[:, t : t + 1]                                 # (N, 1)
        c_t = CmT[:, t : t + 1]                                 # (N, 1)
        state = dA_all[t * N : (t + 1) * N, :] * state + dtu[t : t + 1, :] * b_t
        ys.append(jnp.sum(state * c_t, axis=0, keepdims=True))  # (1, I)
    y = jnp.concatenate(ys, axis=0)                             # (L, I)

    # ---- skip connection, gating, out_proj (lane-dense HP=128 store) --------
    scan_out = (y + u * D_ref[...]) * _silu(gate)               # (L, I)
    out = jnp.dot(scan_out.astype(bf16), w_out_ref[...], preferred_element_type=f32)
    o_ref[0] = out                                              # (L, HP) full vst


def prepare_params(p):
    """One-time weight prep: fuse, pad to lane boundaries, cast MXU weights to
    bf16, and precompute -exp(A_log).T (scan stays f32)."""
    I = p["w_in_x"].shape[1]
    R = p["w_dt"].shape[1]
    N = p["w_B"].shape[1]
    H = p["w_out"].shape[1]
    HP = max(LANE, ((H + LANE - 1) // LANE) * LANE)

    w_in = jnp.concatenate([p["w_in_x"], p["w_in_g"]], axis=1).astype(jnp.bfloat16)

    w_xp = jnp.zeros((I, 3 * LANE), jnp.float32)
    w_xp = w_xp.at[:, :R].set(p["w_dt"])
    w_xp = w_xp.at[:, LANE : LANE + N].set(p["w_B"])
    w_xp = w_xp.at[:, 2 * LANE : 2 * LANE + N].set(p["w_C"])
    w_xp = w_xp.astype(jnp.bfloat16)

    w_out = jnp.zeros((I, HP), jnp.float32).at[:, :H].set(p["w_out"]).astype(jnp.bfloat16)
    A_T = (-jnp.exp(p["A_log"])).T                              # (N, I) f32

    return dict(
        w_in=w_in, w_conv=p["w_conv"], b_conv=p["b_conv"], w_xp=w_xp,
        dtln_w=p["dtln_w"], bln_w=p["bln_w"], cln_w=p["cln_w"],
        w_dtp=p["w_dtp"], b_dtp=p["b_dtp"], A_T=A_T, D=p["D"], w_out=w_out,
    )


@jax.jit
def jamba_mamba_mixer(x, pp):
    """x: [B, L, H] float32. pp: prepare_params(...) output."""
    B, L, H = x.shape
    HP = pp["w_out"].shape[1]

    def full(a):
        return pl.BlockSpec(a.shape, lambda b, _nd=a.ndim: (0,) * _nd)

    in_specs = [
        pl.BlockSpec((1, L, H), lambda b: (b, 0, 0)),
        full(pp["w_in"]), full(pp["w_conv"]), full(pp["b_conv"]), full(pp["w_xp"]),
        full(pp["dtln_w"]), full(pp["bln_w"]), full(pp["cln_w"]),
        full(pp["w_dtp"]), full(pp["b_dtp"]), full(pp["A_T"]), full(pp["D"]),
        full(pp["w_out"]),
    ]
    out = pl.pallas_call(
        mamba_mixer_kernel,
        out_shape=jax.ShapeDtypeStruct((B, L, HP), jnp.float32),
        grid=(B,),
        in_specs=in_specs,
        out_specs=pl.BlockSpec((1, L, HP), lambda b: (b, 0, 0)),
        compiler_params=pltpu.CompilerParams(dimension_semantics=("parallel",)),
    )(
        x,
        pp["w_in"], pp["w_conv"], pp["b_conv"], pp["w_xp"],
        pp["dtln_w"], pp["bln_w"], pp["cln_w"],
        pp["w_dtp"], pp["b_dtp"], pp["A_T"], pp["D"], pp["w_out"],
    )
    return out[..., :H]


# -------------------- pure-JAX fp32 reference (mirrors slow_forward) ----------
def reference_forward(x, p):
    B, L, H = x.shape
    K = p["w_conv"].shape[0]
    hp = jax.lax.Precision.HIGHEST

    hs = jnp.einsum("blh,hi->bli", x, p["w_in_x"], precision=hp)
    gate = jnp.einsum("blh,hi->bli", x, p["w_in_g"], precision=hp)

    hs_pad = jnp.pad(hs, ((0, 0), (K - 1, 0), (0, 0)))
    conv = sum(hs_pad[:, k : k + L, :] * p["w_conv"][k][None, None, :] for k in range(K))
    conv = conv + p["b_conv"][0][None, None, :]
    u = _silu(conv)

    ts = _rmsnorm(jnp.einsum("bli,ir->blr", u, p["w_dt"], precision=hp), p["dtln_w"][0])
    Bm = _rmsnorm(jnp.einsum("bli,in->bln", u, p["w_B"], precision=hp), p["bln_w"][0])
    Cm = _rmsnorm(jnp.einsum("bli,in->bln", u, p["w_C"], precision=hp), p["cln_w"][0])

    dts = _softplus(
        jnp.einsum("blr,ri->bli", ts, p["w_dtp"], precision=hp) + p["b_dtp"][0]
    )                                                      # (B, L, I)

    A = -jnp.exp(p["A_log"])                               # (I, N)
    dA = jnp.exp(dts[..., None] * A[None, None])           # (B, L, I, N)
    dBu = dts[..., None] * Bm[:, :, None, :] * u[..., None]

    state = jnp.zeros((B,) + p["A_log"].shape, jnp.float32)
    ys = []
    for t in range(L):
        state = dA[:, t] * state + dBu[:, t]
        ys.append(jnp.einsum("bin,bn->bi", state, Cm[:, t], precision=hp))
    y = jnp.stack(ys, axis=1)                              # (B, L, I)
    y = y + u * p["D"][0][None, None, :]
    y = y * _silu(gate)
    return jnp.einsum("bli,ih->blh", y, p["w_out"], precision=hp)


if __name__ == "__main__":
    # Config: hidden=32, expand=2 -> I=64, d_state=16, d_conv=4, dt_rank=2
    B, L, H = 2, 8, 32
    I, N, K, R = 64, 16, 4, 2

    key = jax.random.PRNGKey(0)
    ks = jax.random.split(key, 10)

    w_in = jax.random.normal(ks[0], (H, 2 * I), jnp.float32) * 0.05
    params = {
        "w_in_x": w_in[:, :I],
        "w_in_g": w_in[:, I:],
        "w_conv": jax.random.normal(ks[1], (K, I), jnp.float32) * 0.2,
        "b_conv": jax.random.normal(ks[2], (1, I), jnp.float32) * 0.1,
        "w_dt": jax.random.normal(ks[3], (I, R), jnp.float32) * 0.05,
        "w_B": jax.random.normal(ks[4], (I, N), jnp.float32) * 0.05,
        "w_C": jax.random.normal(ks[5], (I, N), jnp.float32) * 0.05,
        "dtln_w": jnp.ones((1, R), jnp.float32),
        "bln_w": jnp.ones((1, N), jnp.float32),
        "cln_w": jnp.ones((1, N), jnp.float32),
        "w_dtp": jax.random.normal(ks[6], (R, I), jnp.float32) * 0.3,
        "b_dtp": jax.random.normal(ks[7], (1, I), jnp.float32) * 0.1,
        "A_log": jnp.broadcast_to(
            jnp.log(jnp.arange(1, N + 1, dtype=jnp.float32))[None, :], (I, N)
        ),
        "D": jnp.ones((1, I), jnp.float32),
        "w_out": jax.random.normal(ks[8], (I, H), jnp.float32) * 0.05,
    }

    x = jax.random.normal(ks[9], (B, L, H), jnp.float32)

    prepped = prepare_params(params)
    out = jax.block_until_ready(jamba_mamba_mixer(x, prepped))
    ref = reference_forward(x, params)

    # Tolerance baselined for bf16 MXU inputs (f32 accumulation / f32 scan)
    # vs. the fp32 "highest" reference.
    np.testing.assert_allclose(np.asarray(out), np.asarray(ref), rtol=3e-2, atol=3e-3)

    print("KERNEL_OK")
</pallas_src>

<mosaic_0001>
module attributes {stable_mosaic.version = 11 : i64} {
  func.func @mamba_mixer_kernel(%arg0: i32, %arg1: memref<1x8x32xf32, #tpu.memory_space<vmem>>, %arg2: memref<32x128xbf16, #tpu.memory_space<vmem>>, %arg3: memref<4x64xf32, #tpu.memory_space<vmem>>, %arg4: memref<1x64xf32, #tpu.memory_space<vmem>>, %arg5: memref<64x384xbf16, #tpu.memory_space<vmem>>, %arg6: memref<1x2xf32, #tpu.memory_space<vmem>>, %arg7: memref<1x16xf32, #tpu.memory_space<vmem>>, %arg8: memref<1x16xf32, #tpu.memory_space<vmem>>, %arg9: memref<2x64xf32, #tpu.memory_space<vmem>>, %arg10: memref<1x64xf32, #tpu.memory_space<vmem>>, %arg11: memref<16x64xf32, #tpu.memory_space<vmem>>, %arg12: memref<1x64xf32, #tpu.memory_space<vmem>>, %arg13: memref<64x128xbf16, #tpu.memory_space<vmem>>, %arg14: memref<1x8x128xf32, #tpu.memory_space<vmem>>) attributes {dimension_semantics = [#tpu.dimension_semantics<parallel>], iteration_bounds = array<i64: 2>, scalar_prefetch = 0 : i64, scratch_operands = 0 : i64, tpu.core_type = #tpu.core_type<tc>, window_params = [{transform_indices = @transform_0, window_bounds = array<i64: 1, 8, 32>}, {pipeline_mode = #tpu.pipeline_mode<synchronous>, transform_indices = @transform_1, window_bounds = array<i64: 32, 128>}, {pipeline_mode = #tpu.pipeline_mode<synchronous>, transform_indices = @transform_2, window_bounds = array<i64: 4, 64>}, {pipeline_mode = #tpu.pipeline_mode<synchronous>, transform_indices = @transform_3, window_bounds = array<i64: 1, 64>}, {pipeline_mode = #tpu.pipeline_mode<synchronous>, transform_indices = @transform_4, window_bounds = array<i64: 64, 384>}, {pipeline_mode = #tpu.pipeline_mode<synchronous>, transform_indices = @transform_5, window_bounds = array<i64: 1, 2>}, {pipeline_mode = #tpu.pipeline_mode<synchronous>, transform_indices = @transform_6, window_bounds = array<i64: 1, 16>}, {pipeline_mode = #tpu.pipeline_mode<synchronous>, transform_indices = @transform_7, window_bounds = array<i64: 1, 16>}, {pipeline_mode = #tpu.pipeline_mode<synchronous>, transform_indices = @transform_8, window_bounds = array<i64: 2, 64>}, {pipeline_mode = #tpu.pipeline_mode<synchronous>, transform_indices = @transform_9, window_bounds = array<i64: 1, 64>}, {pipeline_mode = #tpu.pipeline_mode<synchronous>, transform_indices = @transform_10, window_bounds = array<i64: 16, 64>}, {pipeline_mode = #tpu.pipeline_mode<synchronous>, transform_indices = @transform_11, window_bounds = array<i64: 1, 64>}, {pipeline_mode = #tpu.pipeline_mode<synchronous>, transform_indices = @transform_12, window_bounds = array<i64: 64, 128>}, {transform_indices = @transform_13, window_bounds = array<i64: 1, 8, 128>}]} {
    %c0 = arith.constant 0 : index
    %c0_0 = arith.constant 0 : index
    %c0_1 = arith.constant 0 : index
    %0 = vector.load %arg1[%c0, %c0_0, %c0_1] : memref<1x8x32xf32, #tpu.memory_space<vmem>>, vector<1x8x32xf32>
    %1 = vector.shape_cast %0 : vector<1x8x32xf32> to vector<8x32xf32>
    %2 = arith.truncf %1 : vector<8x32xf32> to vector<8x32xbf16>
    %c0_2 = arith.constant 0 : index
    %c0_3 = arith.constant 0 : index
    %3 = vector.load %arg2[%c0_2, %c0_3] : memref<32x128xbf16, #tpu.memory_space<vmem>>, vector<32x128xbf16>
    %cst = arith.constant dense<0.000000e+00> : vector<8x128xf32>
    %4 = tpu.matmul %2, %3, %cst {dimension_numbers = #tpu.dot_dimension_numbers<[1], [0], [0], [1], [0, 0, 1, 1], [], []>} : vector<8x32xbf16>, vector<32x128xbf16>, vector<8x128xf32> -> vector<8x128xf32>
    %5 = vector.extract_strided_slice %4 {offsets = [0, 0], sizes = [8, 64], strides = [1, 1]} : vector<8x128xf32> to vector<8x64xf32>
    %6 = vector.extract_strided_slice %4 {offsets = [0, 64], sizes = [8, 64], strides = [1, 1]} : vector<8x128xf32> to vector<8x64xf32>
    %c0_4 = arith.constant 0 : index
    %c0_5 = arith.constant 0 : index
    %7 = vector.load %arg3[%c0_4, %c0_5] : memref<4x64xf32, #tpu.memory_space<vmem>>, vector<4x64xf32>
    %8 = vector.extract_strided_slice %7 {offsets = [3, 0], sizes = [1, 64], strides = [1, 1]} : vector<4x64xf32> to vector<1x64xf32>
    %9 = vector.broadcast %8 : vector<1x64xf32> to vector<8x64xf32>
    %10 = arith.mulf %5, %9 : vector<8x64xf32>
    %cst_6 = arith.constant 0.000000e+00 : f32
    %11 = vector.broadcast %cst_6 : f32 to vector<1x64xf32>
    %12 = vector.extract_strided_slice %5 {offsets = [0, 0], sizes = [7, 64], strides = [1, 1]} : vector<8x64xf32> to vector<7x64xf32>
    %13 = tpu.concatenate %11, %12 in 0 : vector<1x64xf32>, vector<7x64xf32> -> vector<8x64xf32>
    %14 = vector.extract_strided_slice %7 {offsets = [2, 0], sizes = [1, 64], strides = [1, 1]} : vector<4x64xf32> to vector<1x64xf32>
    %15 = vector.broadcast %14 : vector<1x64xf32> to vector<8x64xf32>
    %16 = arith.mulf %13, %15 : vector<8x64xf32>
    %17 = arith.addf %10, %16 : vector<8x64xf32>
    %cst_7 = arith.constant 0.000000e+00 : f32
    %18 = vector.broadcast %cst_7 : f32 to vector<2x64xf32>
    %19 = vector.extract_strided_slice %5 {offsets = [0, 0], sizes = [6, 64], strides = [1, 1]} : vector<8x64xf32> to vector<6x64xf32>
    %20 = tpu.concatenate %18, %19 in 0 : vector<2x64xf32>, vector<6x64xf32> -> vector<8x64xf32>
    %21 = vector.extract_strided_slice %7 {offsets = [1, 0], sizes = [1, 64], strides = [1, 1]} : vector<4x64xf32> to vector<1x64xf32>
    %22 = vector.broadcast %21 : vector<1x64xf32> to vector<8x64xf32>
    %23 = arith.mulf %20, %22 : vector<8x64xf32>
    %24 = arith.addf %17, %23 : vector<8x64xf32>
    %cst_8 = arith.constant 0.000000e+00 : f32
    %25 = vector.broadcast %cst_8 : f32 to vector<3x64xf32>
    %26 = vector.extract_strided_slice %5 {offsets = [0, 0], sizes = [5, 64], strides = [1, 1]} : vector<8x64xf32> to vector<5x64xf32>
    %27 = tpu.concatenate %25, %26 in 0 : vector<3x64xf32>, vector<5x64xf32> -> vector<8x64xf32>
    %28 = vector.extract_strided_slice %7 {offsets = [0, 0], sizes = [1, 64], strides = [1, 1]} : vector<4x64xf32> to vector<1x64xf32>
    %29 = vector.broadcast %28 : vector<1x64xf32> to vector<8x64xf32>
    %30 = arith.mulf %27, %29 : vector<8x64xf32>
    %31 = arith.addf %24, %30 : vector<8x64xf32>
    %c0_9 = arith.constant 0 : index
    %c0_10 = arith.constant 0 : index
    %32 = vector.load %arg4[%c0_9, %c0_10] : memref<1x64xf32, #tpu.memory_space<vmem>>, vector<1x64xf32>
    %33 = vector.broadcast %32 : vector<1x64xf32> to vector<8x64xf32>
    %34 = arith.addf %31, %33 : vector<8x64xf32>
    %35 = arith.negf %34 : vector<8x64xf32>
    %36 = math.exp %35 : vector<8x64xf32>
    %cst_11 = arith.constant 1.000000e+00 : f32
    %37 = vector.broadcast %cst_11 : f32 to vector<8x64xf32>
    %38 = arith.addf %37, %36 : vector<8x64xf32>
    %39 = arith.divf %37, %38 : vector<8x64xf32>
    %40 = arith.mulf %34, %39 : vector<8x64xf32>
    %41 = arith.truncf %40 : vector<8x64xf32> to vector<8x64xbf16>
    %c0_12 = arith.constant 0 : index
    %c0_13 = arith.constant 0 : index
    %42 = vector.load %arg5[%c0_12, %c0_13] : memref<64x384xbf16, #tpu.memory_space<vmem>>, vector<64x384xbf16>
    %cst_14 = arith.constant dense<0.000000e+00> : vector<8x384xf32>
    %43 = tpu.matmul %41, %42, %cst_14 {dimension_numbers = #tpu.dot_dimension_numbers<[1], [0], [0], [1], [0, 0, 1, 1], [], []>} : vector<8x64xbf16>, vector<64x384xbf16>, vector<8x384xf32> -> vector<8x384xf32>
    %44 = vector.extract_strided_slice %43 {offsets = [0, 0], sizes = [8, 2], strides = [1, 1]} : vector<8x384xf32> to vector<8x2xf32>
    %c0_15 = arith.constant 0 : index
    %c0_16 = arith.constant 0 : index
    %45 = vector.load %arg6[%c0_15, %c0_16] : memref<1x2xf32, #tpu.memory_space<vmem>>, vector<1x2xf32>
    %46 = arith.mulf %44, %44 : vector<8x2xf32>
    %cst_17 = arith.constant dense<0.000000e+00> : vector<8xf32>
    %47 = vector.multi_reduction <add>, %46, %cst_17 [1] : vector<8x2xf32> to vector<8xf32>
    %48 = vector.shape_cast %47 : vector<8xf32> to vector<8x1xf32>
    %cst_18 = arith.constant 2.000000e+00 : f32
    %49 = vector.broadcast %cst_18 : f32 to vector<8x1xf32>
    %50 = arith.divf %48, %49 : vector<8x1xf32>
    %cst_19 = arith.constant 9.99999997E-7 : f32
    %51 = vector.broadcast %cst_19 : f32 to vector<8x1xf32>
    %52 = arith.addf %50, %51 : vector<8x1xf32>
    %53 = math.rsqrt %52 : vector<8x1xf32>
    %54 = vector.broadcast %53 : vector<8x1xf32> to vector<8x2xf32>
    %55 = arith.mulf %44, %54 : vector<8x2xf32>
    %56 = vector.broadcast %45 : vector<1x2xf32> to vector<8x2xf32>
    %57 = arith.mulf %55, %56 : vector<8x2xf32>
    %58 = vector.extract_strided_slice %43 {offsets = [0, 128], sizes = [8, 16], strides = [1, 1]} : vector<8x384xf32> to vector<8x16xf32>
    %c0_20 = arith.constant 0 : index
    %c0_21 = arith.constant 0 : index
    %59 = vector.load %arg7[%c0_20, %c0_21] : memref<1x16xf32, #tpu.memory_space<vmem>>, vector<1x16xf32>
    %60 = arith.mulf %58, %58 : vector<8x16xf32>
    %cst_22 = arith.constant dense<0.000000e+00> : vector<8xf32>
    %61 = vector.multi_reduction <add>, %60, %cst_22 [1] : vector<8x16xf32> to vector<8xf32>
    %62 = vector.shape_cast %61 : vector<8xf32> to vector<8x1xf32>
    %cst_23 = arith.constant 1.600000e+01 : f32
    %63 = vector.broadcast %cst_23 : f32 to vector<8x1xf32>
    %64 = arith.divf %62, %63 : vector<8x1xf32>
    %cst_24 = arith.constant 9.99999997E-7 : f32
    %65 = vector.broadcast %cst_24 : f32 to vector<8x1xf32>
    %66 = arith.addf %64, %65 : vector<8x1xf32>
    %67 = math.rsqrt %66 : vector<8x1xf32>
    %68 = vector.broadcast %67 : vector<8x1xf32> to vector<8x16xf32>
    %69 = arith.mulf %58, %68 : vector<8x16xf32>
    %70 = vector.broadcast %59 : vector<1x16xf32> to vector<8x16xf32>
    %71 = arith.mulf %69, %70 : vector<8x16xf32>
    %72 = vector.extract_strided_slice %43 {offsets = [0, 256], sizes = [8, 16], strides = [1, 1]} : vector<8x384xf32> to vector<8x16xf32>
    %c0_25 = arith.constant 0 : index
    %c0_26 = arith.constant 0 : index
    %73 = vector.load %arg8[%c0_25, %c0_26] : memref<1x16xf32, #tpu.memory_space<vmem>>, vector<1x16xf32>
    %74 = arith.mulf %72, %72 : vector<8x16xf32>
    %cst_27 = arith.constant dense<0.000000e+00> : vector<8xf32>
    %75 = vector.multi_reduction <add>, %74, %cst_27 [1] : vector<8x16xf32> to vector<8xf32>
    %76 = vector.shape_cast %75 : vector<8xf32> to vector<8x1xf32>
    %cst_28 = arith.constant 1.600000e+01 : f32
    %77 = vector.broadcast %cst_28 : f32 to vector<8x1xf32>
    %78 = arith.divf %76, %77 : vector<8x1xf32>
    %cst_29 = arith.constant 9.99999997E-7 : f32
    %79 = vector.broadcast %cst_29 : f32 to vector<8x1xf32>
    %80 = arith.addf %78, %79 : vector<8x1xf32>
    %81 = math.rsqrt %80 : vector<8x1xf32>
    %82 = vector.broadcast %81 : vector<8x1xf32> to vector<8x16xf32>
    %83 = arith.mulf %72, %82 : vector<8x16xf32>
    %84 = vector.broadcast %73 : vector<1x16xf32> to vector<8x16xf32>
    %85 = arith.mulf %83, %84 : vector<8x16xf32>
    %c0_30 = arith.constant 0 : index
    %c0_31 = arith.constant 0 : index
    %86 = vector.load %arg10[%c0_30, %c0_31] : memref<1x64xf32, #tpu.memory_space<vmem>>, vector<1x64xf32>
    %c0_32 = arith.constant 0 : index
    %c0_33 = arith.constant 0 : index
    %87 = vector.load %arg9[%c0_32, %c0_33] : memref<2x64xf32, #tpu.memory_space<vmem>>, vector<2x64xf32>
    %88 = vector.extract_strided_slice %57 {offsets = [0, 0], sizes = [8, 1], strides = [1, 1]} : vector<8x2xf32> to vector<8x1xf32>
    %89 = vector.extract_strided_slice %87 {offsets = [0, 0], sizes = [1, 64], strides = [1, 1]} : vector<2x64xf32> to vector<1x64xf32>
    %90 = vector.broadcast %88 : vector<8x1xf32> to vector<8x64xf32>
    %91 = vector.broadcast %89 : vector<1x64xf32> to vector<8x64xf32>
    %92 = arith.mulf %90, %91 : vector<8x64xf32>
    %93 = vector.broadcast %86 : vector<1x64xf32> to vector<8x64xf32>
    %94 = arith.addf %93, %92 : vector<8x64xf32>
    %95 = vector.extract_strided_slice %57 {offsets = [0, 1], sizes = [8, 1], strides = [1, 1]} : vector<8x2xf32> to vector<8x1xf32>
    %96 = vector.extract_strided_slice %87 {offsets = [1, 0], sizes = [1, 64], strides = [1, 1]} : vector<2x64xf32> to vector<1x64xf32>
    %97 = vector.broadcast %95 : vector<8x1xf32> to vector<8x64xf32>
    %98 = vector.broadcast %96 : vector<1x64xf32> to vector<8x64xf32>
    %99 = arith.mulf %97, %98 : vector<8x64xf32>
    %100 = arith.addf %94, %99 : vector<8x64xf32>
    %cst_34 = arith.constant 2.000000e+01 : f32
    %101 = vector.broadcast %cst_34 : f32 to vector<8x64xf32>
    %102 = arith.cmpf ogt, %100, %101 : vector<8x64xf32>
    %cst_35 = arith.constant 2.000000e+01 : f32
    %103 = vector.broadcast %cst_35 : f32 to vector<8x64xf32>
    %104 = arith.minimumf %100, %103 : vector<8x64xf32>
    %105 = math.exp %104 : vector<8x64xf32>
    %106 = math.log1p %105 : vector<8x64xf32>
    %107 = arith.select %102, %100, %106 : vector<8x64xi1>, vector<8x64xf32>
    %108 = tpu.iota {dimensions = array<i32: 0>} : vector<16x1x16xi32>
    %109 = tpu.iota {dimensions = array<i32: 2>} : vector<16x1x16xi32>
    %110 = arith.cmpi eq, %108, %109 : vector<16x1x16xi32>
    %111 = arith.extui %110 : vector<16x1x16xi1> to vector<16x1x16xi32>
    %112 = arith.sitofp %111 : vector<16x1x16xi32> to vector<16x1x16xf32>
    %113 = vector.shape_cast %71 : vector<8x16xf32> to vector<1x8x16xf32>
    %114 = vector.broadcast %112 : vector<16x1x16xf32> to vector<16x8x16xf32>
    %115 = vector.broadcast %113 : vector<1x8x16xf32> to vector<16x8x16xf32>
    %116 = arith.mulf %114, %115 : vector<16x8x16xf32>
    %cst_36 = arith.constant dense<0.000000e+00> : vector<16x8xf32>
    %117 = vector.multi_reduction <add>, %116, %cst_36 [2] : vector<16x8x16xf32> to vector<16x8xf32>
    %118 = vector.shape_cast %85 : vector<8x16xf32> to vector<1x8x16xf32>
    %119 = vector.broadcast %112 : vector<16x1x16xf32> to vector<16x8x16xf32>
    %120 = vector.broadcast %118 : vector<1x8x16xf32> to vector<16x8x16xf32>
    %121 = arith.mulf %119, %120 : vector<16x8x16xf32>
    %cst_37 = arith.constant dense<0.000000e+00> : vector<16x8xf32>
    %122 = vector.multi_reduction <add>, %121, %cst_37 [2] : vector<16x8x16xf32> to vector<16x8xf32>
    %c0_38 = arith.constant 0 : index
    %c0_39 = arith.constant 0 : index
    %123 = vector.load %arg11[%c0_38, %c0_39] : memref<16x64xf32, #tpu.memory_space<vmem>>, vector<16x64xf32>
    %124 = vector.extract_strided_slice %107 {offsets = [0, 0], sizes = [1, 64], strides = [1, 1]} : vector<8x64xf32> to vector<1x64xf32>
    %125 = vector.broadcast %124 : vector<1x64xf32> to vector<16x64xf32>
    %126 = arith.mulf %123, %125 : vector<16x64xf32>
    %127 = vector.extract_strided_slice %107 {offsets = [1, 0], sizes = [1, 64], strides = [1, 1]} : vector<8x64xf32> to vector<1x64xf32>
    %128 = vector.broadcast %127 : vector<1x64xf32> to vector<16x64xf32>
    %129 = arith.mulf %123, %128 : vector<16x64xf32>
    %130 = vector.extract_strided_slice %107 {offsets = [2, 0], sizes = [1, 64], strides = [1, 1]} : vector<8x64xf32> to vector<1x64xf32>
    %131 = vector.broadcast %130 : vector<1x64xf32> to vector<16x64xf32>
    %132 = arith.mulf %123, %131 : vector<16x64xf32>
    %133 = vector.extract_strided_slice %107 {offsets = [3, 0], sizes = [1, 64], strides = [1, 1]} : vector<8x64xf32> to vector<1x64xf32>
    %134 = vector.broadcast %133 : vector<1x64xf32> to vector<16x64xf32>
    %135 = arith.mulf %123, %134 : vector<16x64xf32>
    %136 = vector.extract_strided_slice %107 {offsets = [4, 0], sizes = [1, 64], strides = [1, 1]} : vector<8x64xf32> to vector<1x64xf32>
    %137 = vector.broadcast %136 : vector<1x64xf32> to vector<16x64xf32>
    %138 = arith.mulf %123, %137 : vector<16x64xf32>
    %139 = vector.extract_strided_slice %107 {offsets = [5, 0], sizes = [1, 64], strides = [1, 1]} : vector<8x64xf32> to vector<1x64xf32>
    %140 = vector.broadcast %139 : vector<1x64xf32> to vector<16x64xf32>
    %141 = arith.mulf %123, %140 : vector<16x64xf32>
    %142 = vector.extract_strided_slice %107 {offsets = [6, 0], sizes = [1, 64], strides = [1, 1]} : vector<8x64xf32> to vector<1x64xf32>
    %143 = vector.broadcast %142 : vector<1x64xf32> to vector<16x64xf32>
    %144 = arith.mulf %123, %143 : vector<16x64xf32>
    %145 = vector.extract_strided_slice %107 {offsets = [7, 0], sizes = [1, 64], strides = [1, 1]} : vector<8x64xf32> to vector<1x64xf32>
    %146 = vector.broadcast %145 : vector<1x64xf32> to vector<16x64xf32>
    %147 = arith.mulf %123, %146 : vector<16x64xf32>
    %148 = tpu.concatenate %126, %129, %132, %135, %138, %141, %144, %147 in 0 : vector<16x64xf32>, vector<16x64xf32>, vector<16x64xf32>, vector<16x64xf32>, vector<16x64xf32>, vector<16x64xf32>, vector<16x64xf32>, vector<16x64xf32> -> vector<128x64xf32>
    %149 = math.exp %148 : vector<128x64xf32>
    %150 = arith.mulf %107, %40 : vector<8x64xf32>
    %cst_40 = arith.constant 0.000000e+00 : f32
    %151 = vector.broadcast %cst_40 : f32 to vector<16x64xf32>
    %152 = vector.extract_strided_slice %117 {offsets = [0, 0], sizes = [16, 1], strides = [1, 1]} : vector<16x8xf32> to vector<16x1xf32>
    %153 = vector.extract_strided_slice %122 {offsets = [0, 0], sizes = [16, 1], strides = [1, 1]} : vector<16x8xf32> to vector<16x1xf32>
    %154 = vector.extract_strided_slice %149 {offsets = [0, 0], sizes = [16, 64], strides = [1, 1]} : vector<128x64xf32> to vector<16x64xf32>
    %155 = arith.mulf %154, %151 : vector<16x64xf32>
    %156 = vector.extract_strided_slice %150 {offsets = [0, 0], sizes = [1, 64], strides = [1, 1]} : vector<8x64xf32> to vector<1x64xf32>
    %157 = vector.broadcast %156 : vector<1x64xf32> to vector<16x64xf32>
    %158 = vector.broadcast %152 : vector<16x1xf32> to vector<16x64xf32>
    %159 = arith.mulf %157, %158 : vector<16x64xf32>
    %160 = arith.addf %155, %159 : vector<16x64xf32>
    %161 = vector.broadcast %153 : vector<16x1xf32> to vector<16x64xf32>
    %162 = arith.mulf %160, %161 : vector<16x64xf32>
    %cst_41 = arith.constant dense<0.000000e+00> : vector<64xf32>
    %163 = vector.multi_reduction <add>, %162, %cst_41 [0] : vector<16x64xf32> to vector<64xf32>
    %164 = vector.shape_cast %163 : vector<64xf32> to vector<1x64xf32>
    %165 = vector.extract_strided_slice %117 {offsets = [0, 1], sizes = [16, 1], strides = [1, 1]} : vector<16x8xf32> to vector<16x1xf32>
    %166 = vector.extract_strided_slice %122 {offsets = [0, 1], sizes = [16, 1], strides = [1, 1]} : vector<16x8xf32> to vector<16x1xf32>
    %167 = vector.extract_strided_slice %149 {offsets = [16, 0], sizes = [16, 64], strides = [1, 1]} : vector<128x64xf32> to vector<16x64xf32>
    %168 = arith.mulf %167, %160 : vector<16x64xf32>
    %169 = vector.extract_strided_slice %150 {offsets = [1, 0], sizes = [1, 64], strides = [1, 1]} : vector<8x64xf32> to vector<1x64xf32>
    %170 = vector.broadcast %169 : vector<1x64xf32> to vector<16x64xf32>
    %171 = vector.broadcast %165 : vector<16x1xf32> to vector<16x64xf32>
    %172 = arith.mulf %170, %171 : vector<16x64xf32>
    %173 = arith.addf %168, %172 : vector<16x64xf32>
    %174 = vector.broadcast %166 : vector<16x1xf32> to vector<16x64xf32>
    %175 = arith.mulf %173, %174 : vector<16x64xf32>
    %cst_42 = arith.constant dense<0.000000e+00> : vector<64xf32>
    %176 = vector.multi_reduction <add>, %175, %cst_42 [0] : vector<16x64xf32> to vector<64xf32>
    %177 = vector.shape_cast %176 : vector<64xf32> to vector<1x64xf32>
    %178 = vector.extract_strided_slice %117 {offsets = [0, 2], sizes = [16, 1], strides = [1, 1]} : vector<16x8xf32> to vector<16x1xf32>
    %179 = vector.extract_strided_slice %122 {offsets = [0, 2], sizes = [16, 1], strides = [1, 1]} : vector<16x8xf32> to vector<16x1xf32>
    %180 = vector.extract_strided_slice %149 {offsets = [32, 0], sizes = [16, 64], strides = [1, 1]} : vector<128x64xf32> to vector<16x64xf32>
    %181 = arith.mulf %180, %173 : vector<16x64xf32>
    %182 = vector.extract_strided_slice %150 {offsets = [2, 0], sizes = [1, 64], strides = [1, 1]} : vector<8x64xf32> to vector<1x64xf32>
    %183 = vector.broadcast %182 : vector<1x64xf32> to vector<16x64xf32>
    %184 = vector.broadcast %178 : vector<16x1xf32> to vector<16x64xf32>
    %185 = arith.mulf %183, %184 : vector<16x64xf32>
    %186 = arith.addf %181, %185 : vector<16x64xf32>
    %187 = vector.broadcast %179 : vector<16x1xf32> to vector<16x64xf32>
    %188 = arith.mulf %186, %187 : vector<16x64xf32>
    %cst_43 = arith.constant dense<0.000000e+00> : vector<64xf32>
    %189 = vector.multi_reduction <add>, %188, %cst_43 [0] : vector<16x64xf32> to vector<64xf32>
    %190 = vector.shape_cast %189 : vector<64xf32> to vector<1x64xf32>
    %191 = vector.extract_strided_slice %117 {offsets = [0, 3], sizes = [16, 1], strides = [1, 1]} : vector<16x8xf32> to vector<16x1xf32>
    %192 = vector.extract_strided_slice %122 {offsets = [0, 3], sizes = [16, 1], strides = [1, 1]} : vector<16x8xf32> to vector<16x1xf32>
    %193 = vector.extract_strided_slice %149 {offsets = [48, 0], sizes = [16, 64], strides = [1, 1]} : vector<128x64xf32> to vector<16x64xf32>
    %194 = arith.mulf %193, %186 : vector<16x64xf32>
    %195 = vector.extract_strided_slice %150 {offsets = [3, 0], sizes = [1, 64], strides = [1, 1]} : vector<8x64xf32> to vector<1x64xf32>
    %196 = vector.broadcast %195 : vector<1x64xf32> to vector<16x64xf32>
    %197 = vector.broadcast %191 : vector<16x1xf32> to vector<16x64xf32>
    %198 = arith.mulf %196, %197 : vector<16x64xf32>
    %199 = arith.addf %194, %198 : vector<16x64xf32>
    %200 = vector.broadcast %192 : vector<16x1xf32> to vector<16x64xf32>
    %201 = arith.mulf %199, %200 : vector<16x64xf32>
    %cst_44 = arith.constant dense<0.000000e+00> : vector<64xf32>
    %202 = vector.multi_reduction <add>, %201, %cst_44 [0] : vector<16x64xf32> to vector<64xf32>
    %203 = vector.shape_cast %202 : vector<64xf32> to vector<1x64xf32>
    %204 = vector.extract_strided_slice %117 {offsets = [0, 4], sizes = [16, 1], strides = [1, 1]} : vector<16x8xf32> to vector<16x1xf32>
    %205 = vector.extract_strided_slice %122 {offsets = [0, 4], sizes = [16, 1], strides = [1, 1]} : vector<16x8xf32> to vector<16x1xf32>
    %206 = vector.extract_strided_slice %149 {offsets = [64, 0], sizes = [16, 64], strides = [1, 1]} : vector<128x64xf32> to vector<16x64xf32>
    %207 = arith.mulf %206, %199 : vector<16x64xf32>
    %208 = vector.extract_strided_slice %150 {offsets = [4, 0], sizes = [1, 64], strides = [1, 1]} : vector<8x64xf32> to vector<1x64xf32>
    %209 = vector.broadcast %208 : vector<1x64xf32> to vector<16x64xf32>
    %210 = vector.broadcast %204 : vector<16x1xf32> to vector<16x64xf32>
    %211 = arith.mulf %209, %210 : vector<16x64xf32>
    %212 = arith.addf %207, %211 : vector<16x64xf32>
    %213 = vector.broadcast %205 : vector<16x1xf32> to vector<16x64xf32>
    %214 = arith.mulf %212, %213 : vector<16x64xf32>
    %cst_45 = arith.constant dense<0.000000e+00> : vector<64xf32>
    %215 = vector.multi_reduction <add>, %214, %cst_45 [0] : vector<16x64xf32> to vector<64xf32>
    %216 = vector.shape_cast %215 : vector<64xf32> to vector<1x64xf32>
    %217 = vector.extract_strided_slice %117 {offsets = [0, 5], sizes = [16, 1], strides = [1, 1]} : vector<16x8xf32> to vector<16x1xf32>
    %218 = vector.extract_strided_slice %122 {offsets = [0, 5], sizes = [16, 1], strides = [1, 1]} : vector<16x8xf32> to vector<16x1xf32>
    %219 = vector.extract_strided_slice %149 {offsets = [80, 0], sizes = [16, 64], strides = [1, 1]} : vector<128x64xf32> to vector<16x64xf32>
    %220 = arith.mulf %219, %212 : vector<16x64xf32>
    %221 = vector.extract_strided_slice %150 {offsets = [5, 0], sizes = [1, 64], strides = [1, 1]} : vector<8x64xf32> to vector<1x64xf32>
    %222 = vector.broadcast %221 : vector<1x64xf32> to vector<16x64xf32>
    %223 = vector.broadcast %217 : vector<16x1xf32> to vector<16x64xf32>
    %224 = arith.mulf %222, %223 : vector<16x64xf32>
    %225 = arith.addf %220, %224 : vector<16x64xf32>
    %226 = vector.broadcast %218 : vector<16x1xf32> to vector<16x64xf32>
    %227 = arith.mulf %225, %226 : vector<16x64xf32>
    %cst_46 = arith.constant dense<0.000000e+00> : vector<64xf32>
    %228 = vector.multi_reduction <add>, %227, %cst_46 [0] : vector<16x64xf32> to vector<64xf32>
    %229 = vector.shape_cast %228 : vector<64xf32> to vector<1x64xf32>
    %230 = vector.extract_strided_slice %117 {offsets = [0, 6], sizes = [16, 1], strides = [1, 1]} : vector<16x8xf32> to vector<16x1xf32>
    %231 = vector.extract_strided_slice %122 {offsets = [0, 6], sizes = [16, 1], strides = [1, 1]} : vector<16x8xf32> to vector<16x1xf32>
    %232 = vector.extract_strided_slice %149 {offsets = [96, 0], sizes = [16, 64], strides = [1, 1]} : vector<128x64xf32> to vector<16x64xf32>
    %233 = arith.mulf %232, %225 : vector<16x64xf32>
    %234 = vector.extract_strided_slice %150 {offsets = [6, 0], sizes = [1, 64], strides = [1, 1]} : vector<8x64xf32> to vector<1x64xf32>
    %235 = vector.broadcast %234 : vector<1x64xf32> to vector<16x64xf32>
    %236 = vector.broadcast %230 : vector<16x1xf32> to vector<16x64xf32>
    %237 = arith.mulf %235, %236 : vector<16x64xf32>
    %238 = arith.addf %233, %237 : vector<16x64xf32>
    %239 = vector.broadcast %231 : vector<16x1xf32> to vector<16x64xf32>
    %240 = arith.mulf %238, %239 : vector<16x64xf32>
    %cst_47 = arith.constant dense<0.000000e+00> : vector<64xf32>
    %241 = vector.multi_reduction <add>, %240, %cst_47 [0] : vector<16x64xf32> to vector<64xf32>
    %242 = vector.shape_cast %241 : vector<64xf32> to vector<1x64xf32>
    %243 = vector.extract_strided_slice %117 {offsets = [0, 7], sizes = [16, 1], strides = [1, 1]} : vector<16x8xf32> to vector<16x1xf32>
    %244 = vector.extract_strided_slice %122 {offsets = [0, 7], sizes = [16, 1], strides = [1, 1]} : vector<16x8xf32> to vector<16x1xf32>
    %245 = vector.extract_strided_slice %149 {offsets = [112, 0], sizes = [16, 64], strides = [1, 1]} : vector<128x64xf32> to vector<16x64xf32>
    %246 = arith.mulf %245, %238 : vector<16x64xf32>
    %247 = vector.extract_strided_slice %150 {offsets = [7, 0], sizes = [1, 64], strides = [1, 1]} : vector<8x64xf32> to vector<1x64xf32>
    %248 = vector.broadcast %247 : vector<1x64xf32> to vector<16x64xf32>
    %249 = vector.broadcast %243 : vector<16x1xf32> to vector<16x64xf32>
    %250 = arith.mulf %248, %249 : vector<16x64xf32>
    %251 = arith.addf %246, %250 : vector<16x64xf32>
    %252 = vector.broadcast %244 : vector<16x1xf32> to vector<16x64xf32>
    %253 = arith.mulf %251, %252 : vector<16x64xf32>
    %cst_48 = arith.constant dense<0.000000e+00> : vector<64xf32>
    %254 = vector.multi_reduction <add>, %253, %cst_48 [0] : vector<16x64xf32> to vector<64xf32>
    %255 = vector.shape_cast %254 : vector<64xf32> to vector<1x64xf32>
    %256 = tpu.concatenate %164, %177, %190, %203, %216, %229, %242, %255 in 0 : vector<1x64xf32>, vector<1x64xf32>, vector<1x64xf32>, vector<1x64xf32>, vector<1x64xf32>, vector<1x64xf32>, vector<1x64xf32>, vector<1x64xf32> -> vector<8x64xf32>
    %c0_49 = arith.constant 0 : index
    %c0_50 = arith.constant 0 : index
    %257 = vector.load %arg12[%c0_49, %c0_50] : memref<1x64xf32, #tpu.memory_space<vmem>>, vector<1x64xf32>
    %258 = vector.broadcast %257 : vector<1x64xf32> to vector<8x64xf32>
    %259 = arith.mulf %40, %258 : vector<8x64xf32>
    %260 = arith.addf %256, %259 : vector<8x64xf32>
    %261 = arith.negf %6 : vector<8x64xf32>
    %262 = math.exp %261 : vector<8x64xf32>
    %cst_51 = arith.constant 1.000000e+00 : f32
    %263 = vector.broadcast %cst_51 : f32 to vector<8x64xf32>
    %264 = arith.addf %263, %262 : vector<8x64xf32>
    %265 = arith.divf %263, %264 : vector<8x64xf32>
    %266 = arith.mulf %6, %265 : vector<8x64xf32>
    %267 = arith.mulf %260, %266 : vector<8x64xf32>
    %268 = arith.truncf %267 : vector<8x64xf32> to vector<8x64xbf16>
    %c0_52 = arith.constant 0 : index
    %c0_53 = arith.constant 0 : index
    %269 = vector.load %arg13[%c0_52, %c0_53] : memref<64x128xbf16, #tpu.memory_space<vmem>>, vector<64x128xbf16>
    %cst_54 = arith.constant dense<0.000000e+00> : vector<8x128xf32>
    %270 = tpu.matmul %268, %269, %cst_54 {dimension_numbers = #tpu.dot_dimension_numbers<[1], [0], [0], [1], [0, 0, 1, 1], [], []>} : vector<8x64xbf16>, vector<64x128xbf16>, vector<8x128xf32> -> vector<8x128xf32>
    %c0_55 = arith.constant 0 : index
    %c0_56 = arith.constant 0 : index
    %c0_57 = arith.constant 0 : index
    %271 = vector.load %arg14[%c0_55, %c0_56, %c0_57] : memref<1x8x128xf32, #tpu.memory_space<vmem>>, vector<1x8x128xf32>
    %272 = vector.shape_cast %271 : vector<1x8x128xf32> to vector<8x128xf32>
    %273 = vector.shape_cast %270 : vector<8x128xf32> to vector<1x8x128xf32>
    tpu.vector_store %arg14[%c0_55, %c0_56, %c0_57], %273 {strides = array<i32>} : memref<1x8x128xf32, #tpu.memory_space<vmem>>, vector<1x8x128xf32>,
    return
  }
  func.func @transform_0(%arg0: i32) -> (i32, i32, i32) {
    %c0_i32 = arith.constant 0 : i32
    %c0_i32_0 = arith.constant 0 : i32
    %c0_i32_1 = arith.constant 0 : i32
    return %arg0, %c0_i32, %c0_i32_0 : i32, i32, i32
  }
  func.func @transform_1(%arg0: i32) -> (i32, i32) {
    %c0_i32 = arith.constant 0 : i32
    %c0_i32_0 = arith.constant 0 : i32
    %c0_i32_1 = arith.constant 0 : i32
    return %c0_i32, %c0_i32_0 : i32, i32
  }
  func.func @transform_2(%arg0: i32) -> (i32, i32) {
    %c0_i32 = arith.constant 0 : i32
    %c0_i32_0 = arith.constant 0 : i32
    %c0_i32_1 = arith.constant 0 : i32
    return %c0_i32, %c0_i32_0 : i32, i32
  }
  func.func @transform_3(%arg0: i32) -> (i32, i32) {
    %c0_i32 = arith.constant 0 : i32
    %c0_i32_0 = arith.constant 0 : i32
    %c0_i32_1 = arith.constant 0 : i32
    return %c0_i32, %c0_i32_0 : i32, i32
  }
  func.func @transform_4(%arg0: i32) -> (i32, i32) {
    %c0_i32 = arith.constant 0 : i32
    %c0_i32_0 = arith.constant 0 : i32
    %c0_i32_1 = arith.constant 0 : i32
    return %c0_i32, %c0_i32_0 : i32, i32
  }
  func.func @transform_5(%arg0: i32) -> (i32, i32) {
    %c0_i32 = arith.constant 0 : i32
    %c0_i32_0 = arith.constant 0 : i32
    %c0_i32_1 = arith.constant 0 : i32
    return %c0_i32, %c0_i32_0 : i32, i32
  }
  func.func @transform_6(%arg0: i32) -> (i32, i32) {
    %c0_i32 = arith.constant 0 : i32
    %c0_i32_0 = arith.constant 0 : i32
    %c0_i32_1 = arith.constant 0 : i32
    return %c0_i32, %c0_i32_0 : i32, i32
  }
  func.func @transform_7(%arg0: i32) -> (i32, i32) {
    %c0_i32 = arith.constant 0 : i32
    %c0_i32_0 = arith.constant 0 : i32
    %c0_i32_1 = arith.constant 0 : i32
    return %c0_i32, %c0_i32_0 : i32, i32
  }
  func.func @transform_8(%arg0: i32) -> (i32, i32) {
    %c0_i32 = arith.constant 0 : i32
    %c0_i32_0 = arith.constant 0 : i32
    %c0_i32_1 = arith.constant 0 : i32
    return %c0_i32, %c0_i32_0 : i32, i32
  }
  func.func @transform_9(%arg0: i32) -> (i32, i32) {
    %c0_i32 = arith.constant 0 : i32
    %c0_i32_0 = arith.constant 0 : i32
    %c0_i32_1 = arith.constant 0 : i32
    return %c0_i32, %c0_i32_0 : i32, i32
  }
  func.func @transform_10(%arg0: i32) -> (i32, i32) {
    %c0_i32 = arith.constant 0 : i32
    %c0_i32_0 = arith.constant 0 : i32
    %c0_i32_1 = arith.constant 0 : i32
    return %c0_i32, %c0_i32_0 : i32, i32
  }
  func.func @transform_11(%arg0: i32) -> (i32, i32) {
    %c0_i32 = arith.constant 0 : i32
    %c0_i32_0 = arith.constant 0 : i32
    %c0_i32_1 = arith.constant 0 : i32
    return %c0_i32, %c0_i32_0 : i32, i32
  }
  func.func @transform_12(%arg0: i32) -> (i32, i32) {
    %c0_i32 = arith.constant 0 : i32
    %c0_i32_0 = arith.constant 0 : i32
    %c0_i32_1 = arith.constant 0 : i32
    return %c0_i32, %c0_i32_0 : i32, i32
  }
  func.func @transform_13(%arg0: i32) -> (i32, i32, i32) {
    %c0_i32 = arith.constant 0 : i32
    %c0_i32_0 = arith.constant 0 : i32
    %c0_i32_1 = arith.constant 0 : i32
    return %arg0, %c0_i32, %c0_i32_0 : i32, i32, i32
  }
}

</mosaic_0001>

<bundles_post_ra>
// kernel: jamba_mamba_mixer.1
= control target key start
LH: loop header
LB: loop body
LE: loop exit
PB: predicated region body
PF: predicated region fallthrough
CT: control target
= control target key end

     0   :  { %s4413_s0 = inlined_call_operand.hbm [shape: f32[2,8,32], index: 0, kind: input, shape index: {}]   ;;  %s4414_s1 = inlined_call_operand.hbm [shape: bf16[32,128], index: 1, kind: input, shape index: {}]   ;;  %s4415_s2 = inlined_call_operand.vmem [shape: f32[4,64], index: 2, kind: input, shape index: {}]   ;;  %s4416_s3 = inlined_call_operand.vmem [shape: f32[1,64], index: 3, kind: input, shape index: {}]   ;;  %s4417_s4 = inlined_call_operand.hbm [shape: bf16[64,384], index: 4, kind: input, shape index: {}]   ;;  %s4418_s5 = inlined_call_operand.hbm [shape: f32[1,2], index: 5, kind: input, shape index: {}]   ;;  %s4419_s6 = inlined_call_operand.hbm [shape: f32[1,16], index: 6, kind: input, shape index: {}]   ;;  %s4420_s7 = inlined_call_operand.hbm [shape: f32[1,16], index: 7, kind: input, shape index: {}]   ;;  %s4421_s8 = inlined_call_operand.vmem [shape: f32[2,64], index: 8, kind: input, shape index: {}]   ;;  %s4422_s9 = inlined_call_operand.hbm [shape: f32[1,64], index: 9, kind: input, shape index: {}]   ;;  %s4423_s10 = inlined_call_operand.hbm [shape: f32[16,64], index: 10, kind: input, shape index: {}]   ;;  %s4424_s11 = inlined_call_operand.hbm [shape: f32[1,64], index: 11, kind: input, shape index: {}]   ;;  %s4425_s12 = inlined_call_operand.hbm [shape: bf16[64,128], index: 12, kind: input, shape index: {}]   ;;  %s4426_s13 = inlined_call_operand.hbm [shape: f32[2,8,128], index: 13, kind: output, shape index: {}]  }
   0x1   :  { %4432 = sst [smem:[#allocation42_spill]] %s4414_s1 }
   0x2   :  { %4433 = sst [smem:[#allocation43_spill]] %s4417_s4 }
   0x3   :  { %4434 = sst [smem:[#allocation44_spill]] %s4418_s5 }
   0x4   :  { %4435 = sst [smem:[#allocation45_spill]] %s4419_s6 }
   0x5   :  { %4436 = sst [smem:[#allocation46_spill]] %s4420_s7 }
   0x6   :  { %4437 = sst [smem:[#allocation47_spill]] %s4421_s8 }
   0x7   :  { %4438 = sst [smem:[#allocation48_spill]] %s4426_s13 }
   0x8   :  { %18 = vsyncpa [#allocation3], 0 }
   0x9   :  { %20 = vsyncpa [#allocation3 + $0x1], 0 }
   0xa   :  { %21 = vsyncpa [#allocation6], 0 }
   0xb   :  { %22 = vsyncpa [#allocation9], 0 }
   0xc   :  { %23 = vsyncpa [#allocation12], 0 }
   0xd   :  { %24 = vsyncpa [#allocation15], 0 }
   0xe   :  { %25 = vsyncpa [#allocation18], 0 }
   0xf   :  { %26 = vsyncpa [#allocation4], 0 }
  0x10   :  { %28 = vsyncpa [#allocation4 + $0x1], 0  ;;  %s3177_s25 = smov 0   ;;  %s3179_s26 = smov 0  }
  0x11   :  { %s3181_s27 = smov 0   ;;  %s3183_s28 = smov 0  }
  0x12 LB: > { %s4439_s1 = sld [smem:[#allocation42_spill]]  ;;  %s3201_s15 = sadd.s32 4294967295, %s3084_s28   ;;  %s3084_s28 = sphi %s3183_s28, %s4537_s28   ;;  %s3080_s27 = sphi %s3181_s27, %s4536_s27   ;;  %s3076_s26 = sphi %s3179_s26, %s4535_s26   ;;  %s3072_s25 = sphi %s3177_s25, %s4534_s25  }
  0x13   : > { %p2344_p0 = scmp.ge.s32.totalorder %s3084_s28, 1  ;;  %p55_p1 = scmp.eq.s32.totalorder %s3201_s15, 0 }
  0x14   : > { %p343_p2 = scmp.lt.s32.totalorder %s3084_s28, 3  ;;  %s3086_s17 = smov [#allocation5]  }
  0x15   : > { %s356_s18 = sshll.u32 %s3086_s17, 4  ;;  %s4441_s5 = sld [smem:[#allocation44_spill]]  ;;  %s357_s18 = int_to_ptr.vmem [resolvable:$true] %s356_s18 }
  0x16   : > { %p3206_p3 = pnand %p2344_p0, %p343_p2  ;;  %s4443_s7 = sld [smem:[#allocation46_spill]] }
  0x17   : > { %s3087_s30 = smov [#allocation8]   ;;  %s3089_s13 = smov 4  }
  0x18   : > { %s354_s14 = sshll.u32 %s4439_s1, 4  ;;  %p2526_p4 = pneg %p3206_p3  ;;  %s355_s14 = int_to_ptr.hbm [resolvable:$true] %s354_s14 }
  0x19   : > { %s391_s17 = sshll.u32 %s3087_s30, 4  ;;  %s4428_s1 = smov 64   ;;  %s392_s17 = int_to_ptr.vmem [resolvable:$true] %s391_s17 }
  0x1a   : > { %p3218_p6 = pnand %p2526_p4, %p55_p1  ;;  %s3090_s23 = smov [#allocation11]  }
  0x1b   : > { %s389_s21 = sshll.u32 %s4441_s5, 4  ;;  %s439_s5 = sshll.u32 %s4423_s10, 4  ;;  %s390_s21 = int_to_ptr.hbm [resolvable:$true] %s389_s21  ;;  %s440_s5 = int_to_ptr.hbm [resolvable:$true] %s439_s5 }
  0x1c   : > { %s413_s29 = sshll.u32 %s4443_s7, 4  ;;  %s415_s24 = sshll.u32 %s3090_s23, 4  ;;  %s414_s29 = int_to_ptr.hbm [resolvable:$true] %s413_s29  ;;  %s416_s24 = int_to_ptr.vmem [resolvable:$true] %s415_s24 }
  0x1d   : > { %2529 = dma.hbm_to_vmem [thread:$0]  (!%p3218_p6), %s355_s14, 256, %s357_s18, [#allocation6], %s4428_s1, %s4428_s1, %s3089_s13  }
  0x1e   : > { %2535 = dma.hbm_to_vmem [thread:$0]  (!%p3218_p6), %s390_s21, 16, %s392_s17, [#allocation9]  }
  0x1f   : > { %2541 = dma.hbm_to_vmem [thread:$0]  (!%p3218_p6), %s414_s29, 16, %s416_s24, [#allocation12]  }
  0x20   : > { %s3091_s30 = smov [#allocation14]   ;;  %s3092_s8 = smov 128  }
  0x21   : > { %s441_s7 = sshll.u32 %s3091_s30, 4  ;;  %s3093_s14 = smov 8   ;;  %s442_s7 = int_to_ptr.vmem [resolvable:$true] %s441_s7 }
  0x22   : > { %2547 = dma.hbm_to_vmem [thread:$0]  (!%p3218_p6), %s440_s5, 256, %s442_s7, [#allocation15], %s3092_s8, %s3092_s8, %s3093_s14  }
  0x23   : > { %s4444_s4 = sld [smem:[#allocation43_spill]]  ;;  %s3094_s19 = smov [#allocation7]  }
  0x24   : > { %s376_s20 = sshll.u32 %s3094_s19, 4  ;;  %s4445_s6 = sld [smem:[#allocation45_spill]]  ;;  %s377_s20 = int_to_ptr.vmem [resolvable:$true] %s376_s20 }
  0x25   : > { %s3095_s24 = smov 192   ;;  %s3096_s30 = smov 12  }
  0x26   : > { %s3097_s5 = smov [#allocation10]   ;;  %s428_s18 = sshll.u32 %s4422_s9, 4  ;;  %s429_s18 = int_to_ptr.hbm [resolvable:$true] %s428_s18 }
  0x27   : > { %s403_s7 = sshll.u32 %s3097_s5, 4  ;;  %s454_s19 = sshll.u32 %s4424_s11, 4  ;;  %s404_s7 = int_to_ptr.vmem [resolvable:$true] %s403_s7  ;;  %s455_s19 = int_to_ptr.hbm [resolvable:$true] %s454_s19 }
  0x28   : > { %s3098_s23 = smov [#allocation13]   ;;  %s465_s5 = sshll.u32 %s4425_s12, 4  ;;  %s466_s5 = int_to_ptr.hbm [resolvable:$true] %s465_s5 }
  0x29   : > { %s374_s17 = sshll.u32 %s4444_s4, 4  ;;  %s4446_s14 = smov 64   ;;  %s375_s17 = int_to_ptr.hbm [resolvable:$true] %s374_s17 }
  0x2a   : > { %s401_s29 = sshll.u32 %s4445_s6, 4  ;;  %s3269_s21 = sadd.s32 1, %s3084_s28   ;;  %s402_s29 = int_to_ptr.hbm [resolvable:$true] %s401_s29 }
  0x2b   : > { %2532 = dma.hbm_to_vmem [thread:$0]  (!%p3218_p6), %s375_s17, 1536, %s377_s20, [#allocation6], %s3095_s24, %s3095_s24, %s3096_s30  }
  0x2c   : > { %2538 = dma.hbm_to_vmem [thread:$0]  (!%p3218_p6), %s402_s29, 16, %s404_s7, [#allocation9]  }
  0x2d   : > { %s430_s17 = sshll.u32 %s3098_s23, 4  ;;  %s3099_s20 = smov [#allocation16]   ;;  %s431_s17 = int_to_ptr.vmem [resolvable:$true] %s430_s17 }
  0x2e   : > { %2544 = dma.hbm_to_vmem [thread:$0]  (!%p3218_p6), %s429_s18, 16, %s431_s17, [#allocation12]  }
  0x2f   : > { %s456_s29 = sshll.u32 %s3099_s20, 4  ;;  %s3100_s7 = smov [#allocation17]   ;;  %s457_s29 = int_to_ptr.vmem [resolvable:$true] %s456_s29 }
  0x30   : > { %2550 = dma.hbm_to_vmem [thread:$0]  (!%p3218_p6), %s455_s19, 16, %s457_s29, [#allocation15]  }
  0x31   : > { %s467_s8 = sshll.u32 %s3100_s7, 4  ;;  %s2343_s18 = sadd.s32 4294967294, %s3084_s28   ;;  %s468_s8 = int_to_ptr.vmem [resolvable:$true] %s467_s8 }
  0x32   : > { %2553 = dma.hbm_to_vmem [thread:$0]  (!%p3218_p6), %s466_s5, 512, %s468_s8, [#allocation18], %s4446_s14, %s4446_s14, %s3089_s13  }
  0x33   : > { %s41_s1 = sadd.s32 1, %s3080_s27  ;;  %s38_s23 = ssub.s32 %s3084_s28, %s3269_s21 }
  0x34   : > { %p48_p7 = scmp.ne.s32.totalorder %s3080_s27, %s3076_s26  ;;  %p39_p8 = scmp.eq.s32.totalorder %s38_s23, 0 }
  0x35   : > { %p49_p9 = scmp.eq.s32.totalorder %s3084_s28, 0  ;;  %p54_p10 = scmp.ne.s32.totalorder %s3076_s26, %s3072_s25 }
  0x36   : > { %p330_p11 = scmp.eq.s32.totalorder %s3201_s15, 1  ;;  %p336_p0 = scmp.eq.s32.totalorder %s2343_s18, 1 }
  0x37   : > { %s3281_s19 = scalar_select %p39_p8, %s3080_s27, %s41_s1  }
  0x38   : > { %p3285_p12 = por %p55_p1, %p54_p10  ;;  %p3289_p13 = por %p330_p11, %p48_p7 }
  0x39   : > { %p50_p2 = por %p49_p9, %p48_p7  ;;  %s481_s17 = sand.u32 1, %s3080_s27  }
  0x3a   : > { %p3294_p4 = por %p336_p0, %p54_p10  ;;  %p2571_p6 = scmp.lt.s32.totalorder %s3084_s28, 2 }
  0x3b   : > { %s2355_s29 = sshll.u32 %s481_s17, 3  ;;  %s2356_s24 = sshll.u32 %s3084_s28, 3 }
  0x3c   : > { %s489_s7 = scalar_lea.hbm %s4413_s0, %s2356_s24  ;;  %s485_s14 = scalar_lea.vmem [#allocation2], %s2355_s29 }
  0x3d   : > { %s491_s8 = sshll.u32 %s489_s7, 4  ;;  %s493_s1 = sshll.u32 %s485_s14, 4  ;;  %s492_s8 = int_to_ptr.hbm [resolvable:$true] %s491_s8  ;;  %s494_s1 = int_to_ptr.vmem [resolvable:$true] %s493_s1 }
  0x3e   : > { %p3303_p8 = pnand %p2571_p6, %p50_p2  ;;  %s482_s23 = scalar_lea.sflag [#allocation3], %s481_s17 }
  0x3f   : > { %s2968_s4 = sshra.s32 %s492_s8, 4  ;;  %s2975_s29 = scalar_lea.hbm %s4413_s0, 16  ;;  %s2969_s4 = int_to_ptr.hbm [resolvable:$true] %s2968_s4 }
  0x40   : > { %s2970_s6 = scalar_lea.hbm %s2969_s4, 8  ;;  %p2972_p9 = pneg %p3303_p8 }
  0x41   : > { %p2971_p7 = scmp.ne.s32.totalorder %s2969_s4, %s2970_s6  ;;  %p2976_p0 = scmp.lt.s32.totalorder %s2969_s4, %s4413_s0 }
  0x42   : > { %p2977_p2 = scmp.lt.s32.totalorder %s2975_s29, %s2970_s6 }
  0x43   : > { %p2973_p10 = pnand %p2972_p9, %p2971_p7 }
  0x44   : > { %p2978_p6 = por %p2977_p2, %p2976_p0 }
  0x45   : > { %p2974_p11 = pneg %p2973_p10 }
  0x47   : > { %p2979_p5 = pnand %p2978_p6, %p2974_p11 }
  0x49   : > { %2982 = shalt.err (!%p2979_p5)
}
  0x4a   : > { %2557 = dma.hbm_to_vmem [thread:$0]  (!%p3303_p8), %s492_s8, 128, %s494_s1, %s482_s23  }
  0x4b   : > { %502 = sbr.rel (%p3206_p3) target bundleno = 1007 (0x3ef), region = 72 }
  0x50   : > { %s3320_s17 = sand.u32 1, %s3076_s26  }
  0x51   : > { %s2358_s14 = sshll.u32 %s3320_s17, 3  ;;  %s505_s24 = scalar_lea.sflag [#allocation3], %s3320_s17 }
  0x52   : > { %s508_s4 = scalar_lea.vmem [#allocation2], %s2358_s14 }
  0x53   : > { %3043 = dma.done.wait (%p3285_p12), %s505_s24, 128  }
  0x54   : > { %3045 = vsyncadd (%p3285_p12), %s505_s24, 4294967168 }
  0x55   : > { %3047 = dma.done.wait (%p55_p1), [#allocation6], 1792  }
  0x56   : > { %3049 = vsyncadd (%p55_p1), [#allocation6], 4294965504 }
  0x57   : > { %3051 = dma.done.wait (%p55_p1), [#allocation9], 32  }
  0x58   : > { %3053 = vsyncadd (%p55_p1), [#allocation9], 4294967264 }
  0x59   : > { %3055 = dma.done.wait (%p55_p1), [#allocation12], 32  }
  0x5a   : > { %3057 = vsyncadd (%p55_p1), [#allocation12], 4294967264 }
  0x5b   : > { %3059 = dma.done.wait (%p55_p1), [#allocation15], 272  }
  0x5c   : > { %3061 = vsyncadd (%p55_p1), [#allocation15], 4294967024 }
  0x5d   : > { %3063 = dma.done.wait (%p55_p1), [#allocation18], 512  }
  0x5e   : > { %3065 = vsyncadd (%p55_p1), [#allocation18], 4294966784  ;;  %v2469_v0 = vld [vmem:[#allocation5 + $0x8] sm:$0xff]  ;;  %v2468_v1 = vld [vmem:[#allocation5] sm:$0xff]  ;;  %vm616_vm0 = vcmask 261120   ;;  %vm639_vm1 = vcmask 1040384  }
  0x5f   : > { %v598_v2 = vld [vmem:[%s508_s4] sm:$0xff]  ;;  %626 = vmatpush.bf16.msra.mxu0 %v2469_v0  ;;  %v2480_v5 = vld [vmem:[#allocation7 + $0x50] sm:$0xf0]  ;;  %v2419_v8 = vld [vmem:[#allocation7 + $0x54] sm:$0xf0]  ;;  %vm646_vm2 = vcmask 1041408  }
  0x60   : > { %v599_v3 = vpack.c.bf16 %v598_v2, %v598_v2  ;;  %v2417_v4 = vld [vmem:[#allocation7 + $0x48] sm:$0xf]  ;;  %v2479_v6 = vld [vmem:[#allocation7 + $0x4c] sm:$0xf]  ;;  %v2425_v9 = vld [vmem:[#allocation7 + $0x50] sm:$0xf] }
  0x61   : > { %v2418_v7 = vor.u32 %v2480_v5, %v2417_v4  ;;  %v2481_v10 = vld [vmem:[#allocation7 + $0x58] sm:$0xf0]  ;;  %v2422_v11 = vor.u32 %v2479_v6, %v2419_v8  ;;  %v2405_v13 = vld [vmem:[#allocation7 + $0x30] sm:$0xf]  ;;  %v2476_v15 = vld [vmem:[#allocation7 + $0x34] sm:$0xf] }
  0x62   : > { %v2426_v12 = vor.u32 %v2481_v10, %v2425_v9  ;;  %v2477_v14 = vld [vmem:[#allocation7 + $0x38] sm:$0xf0]  ;;  %v2407_v17 = vld [vmem:[#allocation7 + $0x3c] sm:$0xf0]  ;;  %v2413_v18 = vld [vmem:[#allocation7 + $0x38] sm:$0xf] }
  0x63   : > { %627 = vmatpush.bf16.msra.mxu0 %v2468_v1  ;;  %772 = vmatpush.bf16.msra.mxu1 %v2418_v7  ;;  %v2406_v16 = vor.u32 %v2477_v14, %v2405_v13  ;;  %v2478_v19 = vld [vmem:[#allocation7 + $0x40] sm:$0xf0]  ;;  %v2410_v20 = vor.u32 %v2476_v15, %v2407_v17  ;;  %v2393_v22 = vld [vmem:[#allocation7 + $0x18] sm:$0xf]  ;;  %v2473_v24 = vld [vmem:[#allocation7 + $0x1c] sm:$0xf] }
  0x64   : > { %785 = vmatpush.bf16.msra.mxu2 %v2422_v11  ;;  %798 = vmatpush.bf16.msra.mxu3 %v2426_v12  ;;  %v2414_v21 = vor.u32 %v2478_v19, %v2413_v18  ;;  %v2474_v23 = vld [vmem:[#allocation7 + $0x20] sm:$0xf0]  ;;  %v2395_v25 = vld [vmem:[#allocation7 + $0x24] sm:$0xf0]  ;;  %v2401_v26 = vld [vmem:[#allocation7 + $0x20] sm:$0xf] }
  0x65   : > { %v2475_v27 = vld [vmem:[#allocation7 + $0x28] sm:$0xf0]  ;;  %v2394_v28 = vor.u32 %v2474_v23, %v2393_v22  ;;  %v2398_v29 = vor.u32 %v2473_v24, %v2395_v25  ;;  %v2381_v31 = vld [vmem:[#allocation7] sm:$0xf]  ;;  %v2470_v33 = vld [vmem:[#allocation7 + $0x4] sm:$0xf] }
  0x66   : > { %2377 = vmatmul.msk.bf16.vlgmr.msra.gmra.mxu0 %vm616_vm0, %v599_v3  ;;  %v2402_v30 = vor.u32 %v2475_v27, %v2401_v26  ;;  %v2471_v32 = vld [vmem:[#allocation7 + $0x8] sm:$0xf0]  ;;  %v2383_v34 = vld [vmem:[#allocation7 + $0xc] sm:$0xf0]  ;;  %v2389_v35 = vld [vmem:[#allocation7 + $0x8] sm:$0xf] }
  0x67   : > { %773 = vmatpush.bf16.msra.mxu1 %v2406_v16  ;;  %v2472_v36 = vld [vmem:[#allocation7 + $0x10] sm:$0xf0]  ;;  %v2382_v37 = vor.u32 %v2471_v32, %v2381_v31  ;;  %v2386_v38 = vor.u32 %v2470_v33, %v2383_v34  ;;  %v633_v40 = vld [vmem:[%s4415_s2] sm:$0xf]  ;;  %vm653_vm3 = vcmask 1042432   ;;  %vm764_vm8 = vcmask 523264  }
  0x68   : > { %786 = vmatpush.bf16.msra.mxu2 %v2410_v20  ;;  %799 = vmatpush.bf16.msra.mxu3 %v2414_v21  ;;  %v2390_v39 = vor.u32 %v2472_v36, %v2389_v35  ;;  %v634_v42 = vperm.slane %v633_v40, 3  ;;  %v641_v43 = vperm.slane %v633_v40, 2  ;;  %v648_v47 = vperm.slane %v633_v40, 1  ;;  %v2638_v59 = vld [vmem:[%s4416_s3] ss:$0 sm:$0xff]  ;;  %s4452_s23 = sld [smem:[#allocation47_spill]] }
  0x69   : > { %v655_v52 = vperm.slane %v633_v40, 0  ;;  %vm809_vm9 = vcmask 15360   ;;  %vm839_vm10 = vcmask 130048   ;;  %v3101_v25 = vmov 2.0   ;;  %s3106_s30 = smov 64   ;;  %s2465_s29 = sshll.u32 %s3201_s15, 3 }
  0x6a   : > { %v3102_v27 = vmov 16.0   ;;  %v3103_v35 = vmov 1   ;;  %v3104_v36 = vmov 0   ;;  %v923_v40 = vlaneseq  ;;  %s4532_s24 = sld [smem:[#allocation48_spill]]  ;;  %s596_s6 = scalar_lea.vmem [#allocation19], %s2358_s14 }
  0x6b   : > { %774 = vmatpush.bf16.msra.mxu1 %v2394_v28  ;;  %2636 = vset.pattern.permute.xlu2 %v3103_v35  ;;  %s2184_s16 = sshll.u32 %s596_s6, 4  ;;  %s2172_s8 = scalar_lea.sflag [#allocation4], %s3320_s17  ;;  %s2185_s16 = int_to_ptr.vmem [resolvable:$true] %s2184_s16 }
  0x6c   : > { %787 = vmatpush.bf16.msra.mxu2 %v2398_v29  ;;  %800 = vmatpush.bf16.msra.mxu3 %v2402_v30 }
  0x6d   : > { %2635 = vset.pattern.permute.xlu1 %v3104_v36  ;;  %2637 = vset.pattern.permute.xlu0 %v3103_v35 }
  0x6f   : > { %775 = vmatpush.bf16.msra.mxu1 %v2382_v37 }
  0x70   : > { %788 = vmatpush.bf16.msra.mxu2 %v2386_v38  ;;  %801 = vmatpush.bf16.msra.mxu3 %v2390_v39  ;;  %s2182_s4 = scalar_lea.hbm %s4532_s24, %s2465_s29 }
  0x71   : > { %s2186_s22 = sshll.u32 %s2182_s4, 4  ;;  %s2187_s22 = int_to_ptr.hbm [resolvable:$true] %s2186_s22 }
  0x72   : > { %s3012_s1 = sshra.s32 %s2187_s22, 4  ;;  %s3013_s1 = int_to_ptr.hbm [resolvable:$true] %s3012_s1 }
  0x73   : > { %s3014_s18 = scalar_lea.hbm %s3013_s1, 8  ;;  %p3019_p12 = scmp.lt.s32.totalorder %s3013_s1, %s4532_s24 }
  0x74   : > { %p3015_p1 = scmp.ne.s32.totalorder %s3013_s1, %s3014_s18 }
  0x76   : > { %p3016_p3 = pnand %p3015_p1, %p3289_p13 }
  0x78   : > { %p3017_p5 = pneg %p3016_p3 }
  0xe3   : > { %v3353_v41 = vpop.f32.mrf.mxu0 }
  0xe4   : > { %v637_v44 = vrot.slane %v3353_v41, 7  ;;  %v644_v45 = vrot.slane %v3353_v41, 6  ;;  %v651_v46 = vrot.slane %v3353_v41, 5  ;;  %v635_v50 = vmul.f32 %v634_v42, %v3353_v41 }
  0xe6   : > { %v640_v48 = vsel %vm639_vm1, 0.0, %v637_v44  ;;  %v647_v49 = vsel %vm646_vm2, 0.0, %v644_v45  ;;  %v654_v53 = vsel %vm653_vm3, 0.0, %v651_v46  ;;  %v3386_v45 = vand.u32 127, %v923_v40 }
  0xe7   : > { %v642_v51 = vmul.f32 %v641_v43, %v640_v48  ;;  %v649_v55 = vmul.f32 %v648_v47, %v647_v49  ;;  %v656_v58 = vmul.f32 %v655_v52, %v654_v53 }
  0xe8   : > { %vm940_vm13 = vcmp.eq.s32.totalorder %v3386_v45, 15 }
  0xe9   : > { %v643_v54 = vadd.f32 %v642_v51, %v635_v50  ;;  %v3105_v51 = vmov 0.0  }
  0xea   : > { %v2445_v52 = vsel %vm940_vm13, 1.0, %v3105_v51  ;;  %vm933_vm13 = vcmp.eq.s32.totalorder %v3386_v45, 8 }
  0xeb   : > { %v631_v56 = vpop.f32.mrf.mxu0  ;;  %v650_v57 = vadd.f32 %v649_v55, %v643_v54 }
  0xed   : > { %v657_v60 = vadd.f32 %v656_v58, %v650_v57 }
  0xef   : > { %v662_v61 = vadd.f32 %v2638_v59, %v657_v60 }
  0xf1   : > { %v2378_v62 = vmul.f32 -1.442695, %v662_v61 }
  0xf3   : > { %2644 = vpow2.f32 %v2378_v62 }
  0xf9   : > { %v2645_v63 = vpop.eup %2644 }
  0xfa   : > { %v666_v0 = vadd.f32 1.0, %v2645_v63 }
  0xfc   : > { %2646 = vrcp.f32 %v666_v0  ;;  %v678_v4 = vand.u32 2147483648, %v666_v0  ;;  %v676_v6 = vand.u32 2147483647, %v666_v0  ;;  %vm672_vm5 = vweird.f32 %v666_v0 }
  0xfd   : > { %2648 = vrcp.f32 %v3101_v25  ;;  %v3401_v25 = vsel %vm933_vm13, 1.0, %v3105_v51  ;;  %vm938_vm13 = vcmp.eq.s32.totalorder %v3386_v45, 13 }
  0xfe   : > { %v679_v8 = vor.u32 1.1754944e-38, %v678_v4  ;;  %vm677_vm7 = vcmp.eq.f32.partialorder %v676_v6, 8.507059e+37  ;;  %2650 = vrcp.f32 %v3102_v27 }
 0x102   : > { %v2647_v1 = vpop.eup %2646 }
 0x103   : > { %v668_v2 = vmul.f32 %v2647_v1, %v666_v0  ;;  %vm673_vm4 = vweird.f32 %v2647_v1  ;;  %v2649_v26 = vpop.eup %2648 }
 0x104   : > { %vm674_vm6 = vmor %vm672_vm5, %vm673_vm4  ;;  %v814_v28 = vmul.f32 2.0, %v2649_v26  ;;  %v2651_v29 = vpop.eup %2650  ;;  %vm818_vm11 = vweird.f32 %v2649_v26 }
 0x105   : > { %v669_v3 = vsub.f32 1.0, %v668_v2  ;;  %v844_v31 = vmul.f32 16.0, %v2651_v29  ;;  %vm848_vm12 = vweird.f32 %v2651_v29  ;;  %v2641_v2 = vld [vmem:[#allocation8] ss:$0 sm:$0xff] }
 0x106   : > { %v815_v30 = vsub.f32 1.0, %v814_v28 }
 0x107   : > { %v670_v5 = vmul.f32 %v2647_v1, %v669_v3  ;;  %v845_v33 = vsub.f32 1.0, %v844_v31 }
 0x108   : > { %v816_v32 = vmul.f32 %v2649_v26, %v815_v30 }
 0x109   : > { %v671_v7 = vadd.f32 %v2647_v1, %v670_v5  ;;  %v846_v37 = vmul.f32 %v2651_v29, %v845_v33 }
 0x10a   : > { %v817_v34 = vadd.f32 %v2649_v26, %v816_v32 }
 0x10b   : > { %v675_v9 = vsel %vm674_vm6, %v2647_v1, %v671_v7  ;;  %v847_v43 = vadd.f32 %v2651_v29, %v846_v37 }
 0x10c   : > { %v680_v10 = vsel %vm677_vm7, %v679_v8, %v675_v9  ;;  %v819_v38 = vsel %vm818_vm11, %v2649_v26, %v817_v34  ;;  %vm926_vm7 = vcmp.eq.s32.totalorder %v3386_v45, 1 }
 0x10d   : > { %v3365_v11 = vmul.f32 %v680_v10, %v662_v61  ;;  %v849_v46 = vsel %vm848_vm12, %v2651_v29, %v847_v43 }
 0x10f   : > { %4451 = vst [vmem:[#allocation27_spill] sm:$0xff] %v3365_v11  ;;  %v683_v12 = vpack.c.bf16 %v3365_v11, %v3365_v11 }
 0x111   : > { %2427 = vmatmul.msk.bf16.vlgmr.msra.gmra.mxu1 %vm764_vm8, %v683_v12  ;;  %2428 = vmatmul.msk.bf16.vlgmr.msra.gmra.mxu2 %vm764_vm8, %v683_v12 }
 0x112   : > { %2429 = vmatmul.msk.bf16.vlgmr.msra.gmra.mxu3 %vm764_vm8, %v683_v12 }
 0x18e   : > { %v3372_v13 = vpop.f32.mrf.mxu1 }
 0x18f   : > { %v808_v14 = vmul.f32 %v3372_v13, %v3372_v13 }
 0x191   : > { %v810_v15 = vsel %vm809_vm9, %v808_v14, 0.0  ;;  %v2640_v14 = vld [vmem:[#allocation10] ss:$0 sm:$0xff] }
 0x192   : > { %811 = vadd.xlane.f32.xlu0 %v810_v15 }
 0x194   : > { %v3376_v16 = vpop.f32.mrf.mxu2 }
 0x195   : > { %v838_v17 = vmul.f32 %v3376_v16, %v3376_v16  ;;  %v3380_v18 = vpop.f32.mrf.mxu3 }
 0x196   : > { %v779_v19 = vpop.f32.mrf.mxu1  ;;  %v868_v20 = vmul.f32 %v3380_v18, %v3380_v18 }
 0x197   : > { %v840_v22 = vsel %vm839_vm10, %v838_v17, 0.0 }
 0x198   : > { %v869_v21 = vsel %vm839_vm10, %v868_v20, 0.0  ;;  %v2431_v20 = vsel %vm926_vm7, 1.0, %v3105_v51  ;;  %vm932_vm7 = vcmp.eq.s32.totalorder %v3386_v45, 7 }
 0x199   : > { %870 = vadd.xlane.f32.xlu1 %v869_v21 }
 0x19a   : > { %841 = vadd.xlane.f32.xlu0 %v840_v22 }
 0x19c   : > { %v792_v23 = vpop.f32.mrf.mxu2 }
 0x19d   : > { %v805_v24 = vpop.f32.mrf.mxu3 }
 0x19e   : > { %v2639_v24 = vld [vmem:[#allocation11] ss:$0 sm:$0xff] }
 0x205   : > { %v812_v39 = vpop.xlane.xlu0 %811 }
 0x206   : > { %v820_v42 = vmul.f32 %v819_v38, %v812_v39 }
 0x208   : > { %v821_v44 = vadd.f32 1e-06, %v820_v42 }
 0x20a   : > { %2652 = vrsqrt.f32 %v821_v44  ;;  %vm828_vm15 = vweird.f32 %v821_v44 }
 0x20c   : > { %v871_v47 = vpop.xlane.xlu1 %870 }
 0x20d   : > { %v872_v48 = vmul.f32 %v871_v47, %v849_v46  ;;  %v842_v49 = vpop.xlane.xlu0 %841 }
 0x20e   : > { %v850_v50 = vmul.f32 %v849_v46, %v842_v49  ;;  %v3452_v49 = vsel %vm932_vm7, 1.0, %v3105_v51 }
 0x20f   : > { %v873_v53 = vadd.f32 1e-06, %v872_v48 }
 0x210   : > { %v2653_v54 = vpop.eup %2652  ;;  %v851_v55 = vadd.f32 1e-06, %v850_v50 }
 0x211   : > { %v823_v56 = vmul.f32 %v2653_v54, %v821_v44  ;;  %2654 = vrsqrt.f32 %v873_v53  ;;  %vm829_vm14 = vweird.f32 %v2653_v54  ;;  %vm880_vm11 = vweird.f32 %v873_v53 }
 0x212   : > { %2656 = vrsqrt.f32 %v851_v55  ;;  %vm830_vm0 = vmor %vm828_vm15, %vm829_vm14  ;;  %vm858_vm5 = vweird.f32 %v851_v55  ;;  %vm934_vm14 = vcmp.eq.s32.totalorder %v3386_v45, 9  ;;  %vm935_vm15 = vcmp.eq.s32.totalorder %v3386_v45, 10 }
 0x213   : > { %v824_v57 = vmul.f32 %v2653_v54, %v823_v56  ;;  %v3413_v30 = vsel %vm934_vm14, 1.0, %v3105_v51  ;;  %v3423_v33 = vsel %vm935_vm15, 1.0, %v3105_v51  ;;  %vm931_vm14 = vcmp.eq.s32.totalorder %v3386_v45, 6 }
 0x214   : > { %vm939_vm15 = vcmp.eq.s32.totalorder %v3386_v45, 14 }
 0x215   : > { %v825_v58 = vmul.f32 0.5, %v824_v57 }
 0x217   : > { %v2655_v59 = vpop.eup %2654  ;;  %v826_v60 = vsub.f32 1.5, %v825_v58 }
 0x218   : > { %v2657_v61 = vpop.eup %2656  ;;  %v875_v62 = vmul.f32 %v2655_v59, %v873_v53  ;;  %vm881_vm9 = vweird.f32 %v2655_v59 }
 0x219   : > { %v853_v63 = vmul.f32 %v2657_v61, %v851_v55  ;;  %v827_v0 = vmul.f32 %v2653_v54, %v826_v60  ;;  %vm859_vm4 = vweird.f32 %v2657_v61  ;;  %vm882_vm12 = vmor %vm880_vm11, %vm881_vm9  ;;  %vm929_vm9 = vcmp.eq.s32.totalorder %v3386_v45, 4 }
 0x21a   : > { %v876_v1 = vmul.f32 %v2655_v59, %v875_v62  ;;  %vm860_vm6 = vmor %vm858_vm5, %vm859_vm4  ;;  %vm927_vm4 = vcmp.eq.s32.totalorder %v3386_v45, 2  ;;  %vm928_vm5 = vcmp.eq.s32.totalorder %v3386_v45, 3  ;;  %vm937_vm11 = vcmp.eq.s32.totalorder %v3386_v45, 12 }
 0x21b   : > { %v854_v3 = vmul.f32 %v2657_v61, %v853_v63  ;;  %v831_v4 = vsel %vm830_vm0, %v2653_v54, %v827_v0  ;;  %vm925_vm0 = vcmp.eq.s32.totalorder %v3386_v45, 0  ;;  %v2432_v38 = vsel %vm927_vm4, 1.0, %v3105_v51 }
 0x21c   : > { %v832_v5 = vmul.f32 %v831_v4, %v3372_v13  ;;  %v877_v7 = vmul.f32 0.5, %v876_v1  ;;  %v3432_v36 = vsel %vm925_vm0, 1.0, %v3105_v51  ;;  %v3439_v40 = vsel %vm928_vm5, 1.0, %v3105_v51 }
 0x21d   : > { %v855_v6 = vmul.f32 0.5, %v854_v3  ;;  %v3467_v57 = vsel %vm937_vm11, 1.0, %v3105_v51  ;;  %v2443_v1 = vsel %vm938_vm13, 1.0, %v3105_v51  ;;  %v3483_v4 = vsel %vm931_vm14, 1.0, %v3105_v51 }
 0x21e   : > { %v836_v8 = vmul.f32 %v2641_v2, %v832_v5  ;;  %v878_v12 = vsub.f32 1.5, %v877_v7  ;;  %v2446_v7 = vmul.f32 -1.442695, %v3353_v41  ;;  %vm1197_vm11 = vcmask 1042434  }
 0x21f   : > { %v856_v9 = vsub.f32 1.5, %v855_v6  ;;  %vm1201_vm13 = vcmask 1044484   ;;  %vm1203_vm14 = vcmask 1045509  }
 0x220   : > { %903 = vperm.xlu2 %2636, %v836_v8   ;;  %893 = vperm.xlu1 %2635, %v836_v8   ;;  %v879_v19 = vmul.f32 %v2655_v59, %v878_v12  ;;  %2658 = vpow2.f32 %v2446_v7 }
 0x221   : > { %v857_v10 = vmul.f32 %v2657_v61, %v856_v9 }
 0x222   : > { %v883_v22 = vsel %vm882_vm12, %v2655_v59, %v879_v19  ;;  %vm930_vm12 = vcmp.eq.s32.totalorder %v3386_v45, 5 }
 0x223   : > { %v861_v15 = vsel %vm860_vm6, %v2657_v61, %v857_v10  ;;  %vm936_vm6 = vcmp.eq.s32.totalorder %v3386_v45, 11  ;;  %v2435_v60 = vsel %vm930_vm12, 1.0, %v3105_v51  ;;  %v2444_v10 = vsel %vm939_vm15, 1.0, %v3105_v51 }
 0x224   : > { %v862_v17 = vmul.f32 %v861_v15, %v3376_v16  ;;  %v884_v16 = vmul.f32 %v883_v22, %v3380_v18  ;;  %v2441_v47 = vsel %vm936_vm6, 1.0, %v3105_v51  ;;  %vm1199_vm12 = vcmask 1043459  }
 0x225   : > { %vm1205_vm15 = vcmask 1046534  }
 0x226   : > { %v3393_v13 = vmul.f32 %v2640_v14, %v862_v17  ;;  %v3408_v28 = vmul.f32 %v2639_v24, %v884_v16  ;;  %v2659_v19 = vpop.eup %2658 }
 0x228   : > { %v974_v21 = vmul.f32 %v2431_v20, %v3393_v13  ;;  %v981_v26 = vmul.f32 %v3401_v25, %v3393_v13  ;;  %v3406_v27 = vmul.f32 %v2445_v52, %v3393_v13  ;;  %v3416_v18 = vmul.f32 %v2445_v52, %v3408_v28 }
 0x229   : > { %v982_v31 = vmul.f32 %v3413_v30, %v3393_v13  ;;  %v983_v34 = vmul.f32 %v3423_v33, %v3393_v13  ;;  %v973_v37 = vmul.f32 %v3432_v36, %v3393_v13  ;;  %v975_v39 = vmul.f32 %v2432_v38, %v3393_v13 }
 0x22a   : > { %v992_v23 = vsel %vm839_vm10, %v974_v21, 0.0  ;;  %v1013_v29 = vsel %vm839_vm10, %v981_v26, 0.0  ;;  %v976_v42 = vmul.f32 %v3439_v40, %v3393_v13  ;;  %v984_v48 = vmul.f32 %v2441_v47, %v3393_v13 }
 0x22b   : > { %993 = vadd.xlane.f32.xlu0 %v992_v23  ;;  %v1016_v32 = vsel %vm839_vm10, %v982_v31, 0.0  ;;  %v1019_v35 = vsel %vm839_vm10, %v983_v34, 0.0  ;;  %v989_v43 = vsel %vm839_vm10, %v973_v37, 0.0  ;;  %v995_v44 = vsel %vm839_vm10, %v975_v39, 0.0 }
 0x22c   : > { %v998_v46 = vsel %vm839_vm10, %v976_v42, 0.0  ;;  %v980_v50 = vmul.f32 %v3452_v49, %v3393_v13  ;;  %v3457_v52 = vsel %vm929_vm9, 1.0, %v3105_v51  ;;  %v1022_v54 = vsel %vm839_vm10, %v984_v48, 0.0 }
 0x22d   : > { %v977_v53 = vmul.f32 %v3457_v52, %v3393_v13  ;;  %v985_v58 = vmul.f32 %v3467_v57, %v3393_v13  ;;  %v1038_v59 = vmul.f32 %v2431_v20, %v3408_v28  ;;  %v978_v61 = vmul.f32 %v2435_v60, %v3393_v13 }
 0x22e   : > { %v1010_v55 = vsel %vm839_vm10, %v980_v50, 0.0  ;;  %v986_v2 = vmul.f32 %v2443_v1, %v3393_v13  ;;  %v1039_v3 = vmul.f32 %v2432_v38, %v3408_v28  ;;  %v979_v5 = vmul.f32 %v3483_v4, %v3393_v13 }
 0x22f   : > { %v1001_v56 = vsel %vm839_vm10, %v977_v53, 0.0  ;;  %v1025_v62 = vsel %vm839_vm10, %v985_v58, 0.0  ;;  %v1056_v63 = vsel %vm839_vm10, %v1038_v59, 0.0  ;;  %v1004_v0 = vsel %vm839_vm10, %v978_v61, 0.0  ;;  %v890_v53 = vld [vmem:[%s4452_s23] sm:$0x3] }
 0x230   : > { %v1028_v6 = vsel %vm839_vm10, %v986_v2, 0.0  ;;  %v1059_v8 = vsel %vm839_vm10, %v1039_v3, 0.0  ;;  %v1007_v9 = vsel %vm839_vm10, %v979_v5, 0.0  ;;  %v987_v12 = vmul.f32 %v2444_v10, %v3393_v13  ;;  %v2642_v59 = vld [vmem:[#allocation13] ss:$0 sm:$0xff] }
 0x231   : > { %v1048_v14 = vmul.f32 %v2441_v47, %v3408_v28  ;;  %v1034_v17 = vsel %vm839_vm10, %v3406_v27, 0.0  ;;  %v1037_v20 = vmul.f32 %v3432_v36, %v3408_v28  ;;  %v1042_v51 = vmul.f32 %v2435_v60, %v3408_v28 }
 0x232   : > { %v1031_v15 = vsel %vm839_vm10, %v987_v12, 0.0  ;;  %v2099_v13 = vadd.f32 1.0, %v2659_v19  ;;  %v1045_v21 = vmul.f32 %v3401_v25, %v3408_v28  ;;  %v1046_v16 = vmul.f32 %v3413_v30, %v3408_v28 }
 0x233   : > { %1014 = vadd.xlane.f32.xlu0 %v1013_v29  ;;  %v1086_v45 = vsel %vm839_vm10, %v1048_v14, 0.0  ;;  %v1053_v22 = vsel %vm839_vm10, %v1037_v20, 0.0  ;;  %v1068_v23 = vsel %vm839_vm10, %v1042_v51, 0.0  ;;  %v1051_v26 = vmul.f32 %v2444_v10, %v3408_v28 }
 0x234   : > { %2660 = vrcp.f32 %v2099_v13  ;;  %v1077_v24 = vsel %vm839_vm10, %v1045_v21, 0.0  ;;  %v1047_v27 = vmul.f32 %v3423_v33, %v3408_v28  ;;  %v1080_v25 = vsel %vm839_vm10, %v1046_v16, 0.0 }
 0x235   : > { %v1095_v31 = vsel %vm839_vm10, %v1051_v26, 0.0  ;;  %v1041_v30 = vmul.f32 %v3457_v52, %v3408_v28  ;;  %v1049_v39 = vmul.f32 %v3467_v57, %v3408_v28  ;;  %v1050_v42 = vmul.f32 %v2443_v1, %v3408_v28 }
 0x236   : > { %vm2105_vm4 = vweird.f32 %v2099_v13  ;;  %v1043_v50 = vmul.f32 %v3483_v4, %v3408_v28  ;;  %v906_v58 = vperm.slane %v890_v53, 1  ;;  %vm1195_vm9 = vcmask 1041409  }
 0x237   : > { %v1065_v37 = vsel %vm839_vm10, %v1041_v30, 0.0  ;;  %v1092_v47 = vsel %vm839_vm10, %v1050_v42, 0.0 }
 0x238   : > { %v1071_v57 = vsel %vm839_vm10, %v1043_v50, 0.0 }
 0x23a   : > { %v2661_v29 = vpop.eup %2660 }
 0x23b   : > { %1017 = vadd.xlane.f32.xlu0 %v1016_v32  ;;  %v1083_v32 = vsel %vm839_vm10, %v1047_v27, 0.0  ;;  %v2101_v34 = vmul.f32 %v2661_v29, %v2099_v13  ;;  %vm2106_vm0 = vweird.f32 %v2661_v29 }
 0x23c   : > { %vm2107_vm5 = vmor %vm2105_vm4, %vm2106_vm0  ;;  %vm1207_vm0 = vcmask 1047559   ;;  %vm2088_vm4 = vcmask 1046528  }
 0x23d   : > { %v2102_v36 = vsub.f32 1.0, %v2101_v34 }
 0x23f   : > { %v2103_v38 = vmul.f32 %v2661_v29, %v2102_v36 }
 0x243   : > { %1020 = vadd.xlane.f32.xlu0 %v1019_v35  ;;  %v1040_v35 = vmul.f32 %v3439_v40, %v3408_v28  ;;  %v1089_v40 = vsel %vm839_vm10, %v1049_v39, 0.0 }
 0x245   : > { %v1062_v33 = vsel %vm839_vm10, %v1040_v35, 0.0 }
 0x249   : > { %990 = vadd.xlane.f32.xlu2 %v989_v43  ;;  %v2104_v43 = vadd.f32 %v2661_v29, %v2103_v38  ;;  %v3567_v38 = vld [vmem:[#allocation14] sm:$0xff] }
 0x24a   : > { %996 = vadd.xlane.f32.xlu1 %v995_v44  ;;  %v2111_v44 = vand.u32 2147483648, %v2099_v13 }
 0x24b   : > { %999 = vadd.xlane.f32.xlu0 %v998_v46  ;;  %v2109_v46 = vand.u32 2147483647, %v2099_v13  ;;  %v2108_v48 = vsel %vm2107_vm5, %v2661_v29, %v2104_v43 }
 0x24c   : > { %v2112_v52 = vor.u32 1.1754944e-38, %v2111_v44  ;;  %v3573_v44 = vld [vmem:[#allocation14 + $0x8] sm:$0xff] }
 0x24d   : > { %vm2110_vm6 = vcmp.eq.f32.partialorder %v2109_v46, 8.507059e+37 }
 0x251   : > { %1023 = vadd.xlane.f32.xlu2 %v1022_v54  ;;  %v2113_v54 = vsel %vm2110_vm6, %v2112_v52, %v2108_v48 }
 0x252   : > { %1011 = vadd.xlane.f32.xlu1 %v1010_v55  ;;  %v1044_v55 = vmul.f32 %v3452_v49, %v3408_v28  ;;  %v2115_v60 = vmul.f32 %v2113_v54, %v3353_v41  ;;  %v1098_v28 = vsel %vm839_vm10, %v3416_v18, 0.0 }
 0x253   : > { %1002 = vadd.xlane.f32.xlu0 %v1001_v56  ;;  %v896_v56 = vperm.slane %v890_v53, 0 }
 0x259   : > { %1026 = vadd.xlane.f32.xlu2 %v1025_v62 }
 0x25a   : > { %1057 = vadd.xlane.f32.xlu1 %v1056_v63  ;;  %v1074_v63 = vsel %vm839_vm10, %v1044_v55, 0.0 }
 0x25b   : > { %1005 = vadd.xlane.f32.xlu0 %v1004_v0 }
 0x261   : > { %1029 = vadd.xlane.f32.xlu2 %v1028_v6 }
 0x262   : > { %1060 = vadd.xlane.f32.xlu1 %v1059_v8 }
 0x263   : > { %1008 = vadd.xlane.f32.xlu0 %v1007_v9 }
 0x269   : > { %1032 = vadd.xlane.f32.xlu2 %v1031_v15 }
 0x26a   : > { %1087 = vadd.xlane.f32.xlu1 %v1086_v45 }
 0x26b   : > { %1035 = vadd.xlane.f32.xlu0 %v1034_v17 }
 0x271   : > { %1054 = vadd.xlane.f32.xlu2 %v1053_v22 }
 0x272   : > { %1069 = vadd.xlane.f32.xlu1 %v1068_v23 }
 0x273   : > { %1078 = vadd.xlane.f32.xlu0 %v1077_v24 }
 0x279   : > { %1081 = vadd.xlane.f32.xlu2 %v1080_v25 }
 0x27a   : > { %1096 = vadd.xlane.f32.xlu1 %v1095_v31  ;;  %v904_v61 = vpop.permute.xlu2 %903 }
 0x27b   : > { %1084 = vadd.xlane.f32.xlu0 %v1083_v32  ;;  %v907_v1 = vmul.f32 %v906_v58, %v904_v61 }
 0x281   : > { %1063 = vadd.xlane.f32.xlu2 %v1062_v33 }
 0x283   : > { %1066 = vadd.xlane.f32.xlu0 %v1065_v37 }
 0x289   : > { %1090 = vadd.xlane.f32.xlu2 %v1089_v40 }
 0x28b   : > { %1093 = vadd.xlane.f32.xlu0 %v1092_v47 }
 0x291   : > { %1072 = vadd.xlane.f32.xlu2 %v1071_v57 }
 0x292   : > { %v894_v62 = vpop.permute.xlu1 %893 }
 0x293   : > { %v897_v0 = vmul.f32 %v896_v56, %v894_v62  ;;  %2117 = vrot.lane.b32.xlu1 %v2115_v60, %s3106_s30  ;;  %1075 = vadd.xlane.f32.xlu0 %v1074_v63  ;;  %s3018_s30 = scalar_lea.hbm %s4532_s24, 16 }
 0x294   : > { %p3020_p8 = scmp.lt.s32.totalorder %s3018_s30, %s3014_s18 }
 0x295   : > { %v901_v2 = vadd.f32 %v2642_v59, %v897_v0 }
 0x296   : > { %p3021_p7 = por %p3020_p8, %p3019_p12 }
 0x297   : > { %v908_v3 = vadd.f32 %v907_v1, %v901_v2 }
 0x298   : > { %p3022_p9 = pnand %p3021_p7, %p3017_p5 }
 0x299   : > { %v910_v49 = vmin.f32 %v908_v3, 20.0  ;;  %1099 = vadd.xlane.f32.xlu2 %v1098_v28  ;;  %vm909_vm7 = vcmp.gt.f32.partialorder %v908_v3, 20.0 }
 0x29b   : > { %v911_v4 = vmul.f32 1.442695, %v910_v49 }
 0x29d   : > { %2662 = vpow2.f32 %v911_v4 }
 0x29e   : > { %v3538_v5 = vpop.xlane.xlu0 %993 }
 0x29f   : > { %v1164_v17 = vperm.slane %v3538_v5, 0  ;;  %v1285_v19 = vperm.slane %v3538_v5, 1  ;;  %v1399_v20 = vperm.slane %v3538_v5, 2  ;;  %v1513_v51 = vperm.slane %v3538_v5, 3 }
 0x2a0   : > { %v1627_v13 = vperm.slane %v3538_v5, 4  ;;  %v1741_v21 = vperm.slane %v3538_v5, 5  ;;  %v1855_v23 = vperm.slane %v3538_v5, 6  ;;  %v1969_v24 = vperm.slane %v3538_v5, 7 }
 0x2a3   : > { %v2663_v41 = vpop.eup %2662 }
 0x2a4   : > { %v913_v6 = vadd.f32 1.0, %v2663_v41  ;;  %v916_v8 = vmul.f32 -0.5, %v2663_v41  ;;  %v919_v12 = vand.u32 2147483647, %v2663_v41 }
 0x2a6   : > { %2664 = vlog2.f32 %v913_v6  ;;  %v3540_v7 = vpop.xlane.xlu0 %1014  ;;  %v917_v10 = vadd.f32 1.0, %v916_v8  ;;  %vm920_vm10 = vcmp.lt.f32.partialorder %v919_v12, 0.0004427343 }
 0x2a7   : > { %v1171_v16 = vperm.slane %v3540_v7, 0  ;;  %v1292_v26 = vperm.slane %v3540_v7, 1  ;;  %v1406_v27 = vperm.slane %v3540_v7, 2  ;;  %v1520_v29 = vperm.slane %v3540_v7, 3 }
 0x2a8   : > { %v918_v15 = vmul.f32 %v2663_v41, %v917_v10  ;;  %v1634_v31 = vperm.slane %v3540_v7, 4  ;;  %v1748_v36 = vperm.slane %v3540_v7, 5  ;;  %v1862_v33 = vperm.slane %v3540_v7, 6 }
 0x2a9   : > { %v1976_v37 = vperm.slane %v3540_v7, 7 }
 0x2ac   : > { %v2665_v9 = vpop.eup %2664 }
 0x2ad   : > { %v915_v14 = vmul.f32 0.6931472, %v2665_v9 }
 0x2ae   : > { %v3542_v45 = vpop.xlane.xlu0 %1017 }
 0x2af   : > { %v921_v18 = vsel %vm920_vm10, %v918_v15, %v915_v14  ;;  %v1407_v25 = vperm.slane %v3542_v45, 2  ;;  %v1521_v32 = vperm.slane %v3542_v45, 3  ;;  %v1635_v34 = vperm.slane %v3542_v45, 4 }
 0x2b0   : > { %v3550_v22 = vsel %vm909_vm7, %v908_v3, %v921_v18  ;;  %v1749_v35 = vperm.slane %v3542_v45, 5  ;;  %v1172_v43 = vperm.slane %v3542_v45, 0  ;;  %v1293_v40 = vperm.slane %v3542_v45, 1 }
 0x2b1   : > { %v1106_v30 = vperm.slane %v3550_v22, 1  ;;  %v1109_v42 = vperm.slane %v3550_v22, 2  ;;  %v1112_v46 = vperm.slane %v3550_v22, 3  ;;  %v1115_v47 = vperm.slane %v3550_v22, 4 }
 0x2b2   : > { %v1118_v48 = vperm.slane %v3550_v22, 5  ;;  %v3579_v50 = vsel %vm1195_vm9, %v1407_v25, %v1406_v27  ;;  %v3584_v53 = vsel %vm1195_vm9, %v1521_v32, %v1520_v29  ;;  %v1665_v54 = vsel %vm1195_vm9, %v1635_v34, %v1634_v31 }
 0x2b3   : > { %v1779_v55 = vsel %vm1195_vm9, %v1749_v35, %v1748_v36  ;;  %v1863_v56 = vperm.slane %v3542_v45, 6  ;;  %v1107_v57 = vmul.f32 %v1106_v30, %v3567_v38  ;;  %v1121_v58 = vperm.slane %v3550_v22, 6 }
 0x2b4   : > { %v1124_v59 = vperm.slane %v3550_v22, 7  ;;  %v1977_v60 = vperm.slane %v3542_v45, 7  ;;  %v1108_v61 = vmul.f32 %v1106_v30, %v3573_v44  ;;  %v1110_v1 = vmul.f32 %v1109_v42, %v3567_v38 }
 0x2b5   : > { %v1893_v62 = vsel %vm1195_vm9, %v1863_v56, %v1862_v33  ;;  %v1111_v2 = vmul.f32 %v1109_v42, %v3573_v44  ;;  %v1113_v3 = vmul.f32 %v1112_v46, %v3567_v38  ;;  %v1114_v4 = vmul.f32 %v1112_v46, %v3573_v44 }
 0x2b6   : > { %v3581_v52 = vpop.xlane.xlu0 %1020  ;;  %v2007_v28 = vsel %vm1195_vm9, %v1977_v60, %v1976_v37  ;;  %v1116_v9 = vmul.f32 %v1115_v47, %v3567_v38  ;;  %v1117_v10 = vmul.f32 %v1115_v47, %v3573_v44  ;;  %v1119_v12 = vmul.f32 %v1118_v48, %v3567_v38 }
 0x2b7   : > { %v1636_v63 = vperm.slane %v3581_v52, 4  ;;  %v1750_v0 = vperm.slane %v3581_v52, 5  ;;  %v1864_v8 = vperm.slane %v3581_v52, 6  ;;  %v1978_v14 = vperm.slane %v3581_v52, 7 }
 0x2b8   : > { %v1120_v15 = vmul.f32 %v1118_v48, %v3573_v44  ;;  %v1122_v25 = vmul.f32 %v1121_v58, %v3567_v38  ;;  %v1123_v31 = vmul.f32 %v1121_v58, %v3573_v44  ;;  %v1125_v32 = vmul.f32 %v1124_v59, %v3567_v38 }
 0x2b9   : > { %v3605_v41 = vsel %vm1197_vm11, %v1636_v63, %v1665_v54  ;;  %v3608_v6 = vsel %vm1197_vm11, %v1750_v0, %v1779_v55  ;;  %v3617_v18 = vsel %vm1197_vm11, %v1864_v8, %v1893_v62  ;;  %v3625_v34 = vsel %vm1197_vm11, %v1978_v14, %v2007_v28 }
 0x2ba   : > { %v3627_v35 = vmul.f32 1.442695, %v1107_v57  ;;  %v1126_v37 = vmul.f32 %v1124_v59, %v3573_v44  ;;  %v3637_v42 = vmul.f32 1.442695, %v1108_v61  ;;  %v3639_v46 = vmul.f32 1.442695, %v1110_v1 }
 0x2bb   : > { %v3642_v54 = vmul.f32 1.442695, %v1111_v2  ;;  %v3644_v55 = vmul.f32 1.442695, %v1113_v3  ;;  %v3653_v56 = vmul.f32 1.442695, %v1114_v4  ;;  %v1209_v1 = vsel %vm1195_vm9, %v1172_v43, %v1171_v16 }
 0x2bc   : > { %v3601_v49 = vpop.xlane.xlu2 %990  ;;  %v3660_v60 = vmul.f32 1.442695, %v1116_v9  ;;  %v3662_v61 = vmul.f32 1.442695, %v1117_v10  ;;  %v3665_v0 = vmul.f32 1.442695, %v1119_v12  ;;  %v1323_v4 = vsel %vm1195_vm9, %v1293_v40, %v1292_v26 }
 0x2bd   : > { %v1626_v27 = vperm.slane %v3601_v49, 4  ;;  %v1740_v29 = vperm.slane %v3601_v49, 5  ;;  %v1854_v33 = vperm.slane %v3601_v49, 6  ;;  %v1968_v47 = vperm.slane %v3601_v49, 7  ;;  %v997_v48 = vpop.xlane.xlu1 %996  ;;  %4453 = vst [vmem:[#allocation28_spill] sm:$0xff] %v3642_v54 }
 0x2be   : > { %4454 = vst [vmem:[#allocation29_spill] sm:$0xff] %v3653_v56  ;;  %v1163_v57 = vperm.slane %v3601_v49, 0  ;;  %v1284_v58 = vperm.slane %v3601_v49, 1  ;;  %v1398_v62 = vperm.slane %v3601_v49, 2  ;;  %v1856_v63 = vperm.slane %v997_v48, 6  ;;  %v3674_v3 = vpop.xlane.xlu0 %999 }
 0x2bf   : > { %v1658_v30 = vsel %vm1195_vm9, %v1627_v13, %v1626_v27  ;;  %v1772_v36 = vsel %vm1195_vm9, %v1741_v21, %v1740_v29  ;;  %v3648_v13 = vmul.f32 %v3550_v22, %v3365_v11  ;;  %v1886_v21 = vsel %vm1195_vm9, %v1855_v23, %v1854_v33  ;;  %4455 = vst [vmem:[#allocation30_spill] sm:$0xff] %v3662_v61 }
 0x2c0   : > { %v2000_v59 = vsel %vm1195_vm9, %v1969_v24, %v1968_v47  ;;  %v3667_v23 = vmul.f32 1.442695, %v1120_v15  ;;  %v1970_v2 = vperm.slane %v997_v48, 7  ;;  %v3676_v24 = vmul.f32 1.442695, %v1122_v25 }
 0x2c1   : > { %v3678_v28 = vmul.f32 1.442695, %v1123_v31  ;;  %v1512_v8 = vperm.slane %v3601_v49, 3  ;;  %v3686_v9 = vmul.f32 1.442695, %v1125_v32  ;;  %v1196_v16 = vsel %vm1195_vm9, %v1164_v17, %v1163_v57 }
 0x2c2   : > { %4456 = vst [vmem:[#allocation31_spill] sm:$0xff] %v3667_v23  ;;  %v1316_v43 = vsel %vm1195_vm9, %v1285_v19, %v1284_v58  ;;  %v1887_v10 = vsel %vm1197_vm11, %v1856_v63, %v1886_v21  ;;  %v1430_v7 = vsel %vm1195_vm9, %v1399_v20, %v1398_v62  ;;  %v1165_v45 = vperm.slane %v997_v48, 0 }
 0x2c3   : > { %4457 = vst [vmem:[#allocation32_spill] sm:$0xff] %v3678_v28  ;;  %v2001_v26 = vsel %vm1197_vm11, %v1970_v2, %v2000_v59  ;;  %v1857_v40 = vperm.slane %v3674_v3, 6  ;;  %v1286_v49 = vperm.slane %v997_v48, 1  ;;  %v1400_v12 = vperm.slane %v997_v48, 2 }
 0x2c4   : > { %v1514_v14 = vperm.slane %v997_v48, 3  ;;  %v1971_v17 = vperm.slane %v3674_v3, 7  ;;  %v1024_v15 = vpop.xlane.xlu2 %1023  ;;  %v1544_v19 = vsel %vm1195_vm9, %v1513_v51, %v1512_v8  ;;  %v1628_v27 = vperm.slane %v997_v48, 4 }
 0x2c5   : > { %v1742_v29 = vperm.slane %v997_v48, 5  ;;  %v3705_v25 = vsel %vm1199_vm12, %v1857_v40, %v1887_v10  ;;  %v3707_v20 = vmul.f32 1.442695, %v1126_v37  ;;  %v1173_v31 = vperm.slane %v3581_v52, 0 }
 0x2c6   : > { %v1294_v32 = vperm.slane %v3581_v52, 1  ;;  %v3712_v33 = vsel %vm1199_vm12, %v1971_v17, %v2001_v26  ;;  %v1408_v47 = vperm.slane %v3581_v52, 2  ;;  %v1522_v5 = vperm.slane %v3581_v52, 3 }
 0x2c7   : > { %4458 = vst [vmem:[#allocation33_spill] sm:$0xff] %v3707_v20  ;;  %v1198_v51 = vsel %vm1197_vm11, %v1165_v45, %v1196_v16  ;;  %v1865_v21 = vperm.slane %v1024_v15, 6  ;;  %v1317_v48 = vsel %vm1197_vm11, %v1286_v49, %v1316_v43  ;;  %v1431_v57 = vsel %vm1197_vm11, %v1400_v12, %v1430_v7  ;;  %v1003_v49 = vpop.xlane.xlu0 %1002 }
 0x2c8   : > { %v1545_v37 = vsel %vm1197_vm11, %v1514_v14, %v1544_v19  ;;  %v1979_v58 = vperm.slane %v1024_v15, 7  ;;  %v1659_v59 = vsel %vm1197_vm11, %v1628_v27, %v1658_v30  ;;  %v1773_v62 = vsel %vm1197_vm11, %v1742_v29, %v1772_v36 }
 0x2c9   : > { %v1166_v63 = vperm.slane %v3674_v3, 0  ;;  %v3725_v2 = vsel %vm1199_vm12, %v1865_v21, %v3617_v18  ;;  %v1287_v52 = vperm.slane %v3674_v3, 1  ;;  %v1401_v8 = vperm.slane %v3674_v3, 2 }
 0x2ca   : > { %v1515_v16 = vperm.slane %v3674_v3, 3  ;;  %v3732_v43 = vsel %vm1199_vm12, %v1979_v58, %v3625_v34  ;;  %v1629_v30 = vperm.slane %v3674_v3, 4  ;;  %v1743_v36 = vperm.slane %v3674_v3, 5 }
 0x2cb   : > { %v1174_v10 = vperm.slane %v1024_v15, 0  ;;  %v1295_v7 = vperm.slane %v1024_v15, 1  ;;  %v1409_v45 = vperm.slane %v1024_v15, 2  ;;  %v1523_v26 = vperm.slane %v1024_v15, 3 }
 0x2cc   : > { %v1637_v18 = vperm.slane %v1024_v15, 4  ;;  %v1751_v40 = vperm.slane %v1024_v15, 5  ;;  %v1210_v12 = vsel %vm1197_vm11, %v1173_v31, %v1209_v1  ;;  %v1324_v14 = vsel %vm1197_vm11, %v1294_v32, %v1323_v4  ;;  %v3746_v15 = vpop.xlane.xlu1 %1011 }
 0x2cd   : > { %v1438_v17 = vsel %vm1197_vm11, %v1408_v47, %v3579_v50  ;;  %v1552_v34 = vsel %vm1197_vm11, %v1522_v5, %v3584_v53  ;;  %v1200_v19 = vsel %vm1199_vm12, %v1166_v63, %v1198_v51  ;;  %v1318_v3 = vsel %vm1199_vm12, %v1287_v52, %v1317_v48 }
 0x2ce   : > { %v1432_v27 = vsel %vm1199_vm12, %v1401_v8, %v1431_v57  ;;  %v1546_v29 = vsel %vm1199_vm12, %v1515_v16, %v1545_v37  ;;  %v1660_v1 = vsel %vm1199_vm12, %v1629_v30, %v1659_v59  ;;  %v1774_v4 = vsel %vm1199_vm12, %v1743_v36, %v1773_v62  ;;  %v1027_v37 = vpop.xlane.xlu2 %1026 }
 0x2cf   : > { %v1211_v31 = vsel %vm1199_vm12, %v1174_v10, %v1210_v12  ;;  %v1325_v50 = vsel %vm1199_vm12, %v1295_v7, %v1324_v14  ;;  %v1439_v53 = vsel %vm1199_vm12, %v1409_v45, %v1438_v17  ;;  %v1553_v32 = vsel %vm1199_vm12, %v1523_v26, %v1552_v34  ;;  %v1006_v17 = vpop.xlane.xlu0 %1005 }
 0x2d0   : > { %v1667_v47 = vsel %vm1199_vm12, %v1637_v18, %v3605_v41  ;;  %v1781_v5 = vsel %vm1199_vm12, %v1751_v40, %v3608_v6  ;;  %v1167_v63 = vperm.slane %v1003_v49, 0  ;;  %v1288_v6 = vperm.slane %v1003_v49, 1 }
 0x2d1   : > { %v1402_v52 = vperm.slane %v1003_v49, 2  ;;  %v1516_v8 = vperm.slane %v1003_v49, 3  ;;  %v1630_v16 = vperm.slane %v1003_v49, 4  ;;  %v1744_v30 = vperm.slane %v1003_v49, 5 }
 0x2d2   : > { %v1858_v36 = vperm.slane %v1003_v49, 6  ;;  %v1972_v10 = vperm.slane %v1003_v49, 7  ;;  %v1175_v7 = vperm.slane %v1027_v37, 0  ;;  %v1296_v45 = vperm.slane %v1027_v37, 1 }
 0x2d3   : > { %v1410_v26 = vperm.slane %v1027_v37, 2  ;;  %v1524_v18 = vperm.slane %v1027_v37, 3  ;;  %v1638_v40 = vperm.slane %v1027_v37, 4  ;;  %v1752_v12 = vperm.slane %v1027_v37, 5 }
 0x2d4   : > { %v1866_v14 = vperm.slane %v1027_v37, 6  ;;  %v1202_v34 = vsel %vm1201_vm13, %v1167_v63, %v1200_v19  ;;  %v1319_v41 = vsel %vm1201_vm13, %v1288_v6, %v1318_v3  ;;  %v1433_v62 = vsel %vm1201_vm13, %v1402_v52, %v1432_v27  ;;  %v3774_v21 = vpop.xlane.xlu1 %1057 }
 0x2d5   : > { %v1980_v59 = vperm.slane %v1027_v37, 7  ;;  %v1547_v58 = vsel %vm1201_vm13, %v1516_v8, %v1546_v29  ;;  %v1661_v57 = vsel %vm1201_vm13, %v1630_v16, %v1660_v1  ;;  %v1775_v49 = vsel %vm1201_vm13, %v1744_v30, %v1774_v4 }
 0x2d6   : > { %v1889_v48 = vsel %vm1201_vm13, %v1858_v36, %v3705_v25  ;;  %v2003_v51 = vsel %vm1201_vm13, %v1972_v10, %v3712_v33  ;;  %v1212_v19 = vsel %vm1201_vm13, %v1175_v7, %v1211_v31  ;;  %v1326_v3 = vsel %vm1201_vm13, %v1296_v45, %v1325_v50  ;;  %v1030_v63 = vpop.xlane.xlu2 %1029 }
 0x2d7   : > { %v1440_v27 = vsel %vm1201_vm13, %v1410_v26, %v1439_v53  ;;  %v1554_v29 = vsel %vm1201_vm13, %v1524_v18, %v1553_v32  ;;  %v1668_v1 = vsel %vm1201_vm13, %v1638_v40, %v1667_v47  ;;  %v1782_v4 = vsel %vm1201_vm13, %v1752_v12, %v1781_v5  ;;  %v1009_v12 = vpop.xlane.xlu0 %1008 }
 0x2d8   : > { %v1896_v25 = vsel %vm1201_vm13, %v1866_v14, %v3725_v2  ;;  %v2010_v37 = vsel %vm1201_vm13, %v1980_v59, %v3732_v43  ;;  %v1168_v6 = vperm.slane %v1006_v17, 0  ;;  %v1289_v43 = vperm.slane %v1006_v17, 1 }
 0x2d9   : > { %v1403_v59 = vperm.slane %v1006_v17, 2  ;;  %v1517_v52 = vperm.slane %v1006_v17, 3  ;;  %v1631_v8 = vperm.slane %v1006_v17, 4  ;;  %v1745_v16 = vperm.slane %v1006_v17, 5 }
 0x2da   : > { %v1859_v30 = vperm.slane %v1006_v17, 6  ;;  %v1973_v36 = vperm.slane %v1006_v17, 7  ;;  %v1176_v10 = vperm.slane %v1030_v63, 0  ;;  %v1297_v7 = vperm.slane %v1030_v63, 1 }
 0x2db   : > { %v1411_v45 = vperm.slane %v1030_v63, 2  ;;  %v1525_v26 = vperm.slane %v1030_v63, 3  ;;  %v1639_v18 = vperm.slane %v1030_v63, 4  ;;  %v1753_v40 = vperm.slane %v1030_v63, 5 }
 0x2dc   : > { %v1204_v14 = vsel %vm1203_vm14, %v1168_v6, %v1202_v34  ;;  %v1320_v39 = vsel %vm1203_vm14, %v1289_v43, %v1319_v41  ;;  %v1867_v2 = vperm.slane %v1030_v63, 6  ;;  %v1981_v5 = vperm.slane %v1030_v63, 7  ;;  %v3802_v50 = vpop.xlane.xlu1 %1060 }
 0x2dd   : > { %v1434_v47 = vsel %vm1203_vm14, %v1403_v59, %v1433_v62  ;;  %v1548_v32 = vsel %vm1203_vm14, %v1517_v52, %v1547_v58  ;;  %v1662_v53 = vsel %vm1203_vm14, %v1631_v8, %v1661_v57  ;;  %v1776_v17 = vsel %vm1203_vm14, %v1745_v16, %v1775_v49 }
 0x2de   : > { %v1890_v31 = vsel %vm1203_vm14, %v1859_v30, %v1889_v48  ;;  %v2004_v33 = vsel %vm1203_vm14, %v1973_v36, %v2003_v51  ;;  %v1213_v34 = vsel %vm1203_vm14, %v1176_v10, %v1212_v19  ;;  %v1327_v41 = vsel %vm1203_vm14, %v1297_v7, %v1326_v3  ;;  %v1033_v43 = vpop.xlane.xlu2 %1032 }
 0x2df   : > { %v1441_v63 = vsel %vm1203_vm14, %v1411_v45, %v1440_v27  ;;  %v1555_v62 = vsel %vm1203_vm14, %v1525_v26, %v1554_v29  ;;  %v1669_v58 = vsel %vm1203_vm14, %v1639_v18, %v1668_v1  ;;  %v1783_v57 = vsel %vm1203_vm14, %v1753_v40, %v1782_v4  ;;  %v1036_v26 = vpop.xlane.xlu0 %1035 }
 0x2e0   : > { %v1897_v49 = vsel %vm1203_vm14, %v1867_v2, %v1896_v25  ;;  %v2011_v6 = vsel %vm1203_vm14, %v1981_v5, %v2010_v37  ;;  %v1169_v25 = vperm.slane %v1009_v12, 0  ;;  %v1290_v37 = vperm.slane %v1009_v12, 1 }
 0x2e1   : > { %v1404_v5 = vperm.slane %v1009_v12, 2  ;;  %v1518_v2 = vperm.slane %v1009_v12, 3  ;;  %v1632_v59 = vperm.slane %v1009_v12, 4  ;;  %v1746_v52 = vperm.slane %v1009_v12, 5 }
 0x2e2   : > { %v1860_v8 = vperm.slane %v1009_v12, 6  ;;  %v1974_v16 = vperm.slane %v1009_v12, 7  ;;  %v1177_v30 = vperm.slane %v1033_v43, 0  ;;  %v1298_v36 = vperm.slane %v1033_v43, 1 }
 0x2e3   : > { %v1412_v10 = vperm.slane %v1033_v43, 2  ;;  %v1526_v7 = vperm.slane %v1033_v43, 3  ;;  %v1640_v45 = vperm.slane %v1033_v43, 4  ;;  %v3823_v18 = vsel %vm1205_vm15, %v1169_v25, %v1204_v14 }
 0x2e4   : > { %v1754_v40 = vperm.slane %v1033_v43, 5  ;;  %v1868_v4 = vperm.slane %v1033_v43, 6  ;;  %v1982_v1 = vperm.slane %v1033_v43, 7  ;;  %v3826_v29 = vsel %vm1205_vm15, %v1290_v37, %v1320_v39  ;;  %v3837_v19 = vpop.xlane.xlu1 %1087 }
 0x2e5   : > { %v3829_v27 = vsel %vm1205_vm15, %v1404_v5, %v1434_v47  ;;  %v3832_v12 = vsel %vm1205_vm15, %v1518_v2, %v1548_v32  ;;  %v3835_v3 = vsel %vm1205_vm15, %v1632_v59, %v1662_v53  ;;  %v3840_v14 = vsel %vm1205_vm15, %v1746_v52, %v1776_v17 }
 0x2e6   : > { %v3843_v25 = vsel %vm1205_vm15, %v1860_v8, %v1890_v31  ;;  %v3846_v39 = vsel %vm1205_vm15, %v1974_v16, %v2004_v33  ;;  %v1214_v47 = vsel %vm1205_vm15, %v1177_v30, %v1213_v34  ;;  %v1328_v43 = vsel %vm1205_vm15, %v1298_v36, %v1327_v41  ;;  %v1055_v33 = vpop.xlane.xlu2 %1054 }
 0x2e7   : > { %v1442_v32 = vsel %vm1205_vm15, %v1412_v10, %v1441_v63  ;;  %v1556_v53 = vsel %vm1205_vm15, %v1526_v7, %v1555_v62  ;;  %v1670_v37 = vsel %vm1205_vm15, %v1640_v45, %v1669_v58  ;;  %v1784_v5 = vsel %vm1205_vm15, %v1754_v40, %v1783_v57  ;;  %v1079_v40 = vpop.xlane.xlu0 %1078 }
 0x2e8   : > { %v1898_v17 = vsel %vm1205_vm15, %v1868_v4, %v1897_v49  ;;  %v2012_v31 = vsel %vm1205_vm15, %v1982_v1, %v2011_v6  ;;  %v1178_v49 = vperm.slane %v1036_v26, 0  ;;  %v1299_v6 = vperm.slane %v1036_v26, 1 }
 0x2e9   : > { %v1413_v1 = vperm.slane %v1036_v26, 2  ;;  %v1527_v4 = vperm.slane %v1036_v26, 3  ;;  %v1641_v52 = vperm.slane %v1036_v26, 4  ;;  %v1755_v8 = vperm.slane %v1036_v26, 5 }
 0x2ea   : > { %v1869_v16 = vperm.slane %v1036_v26, 6  ;;  %v1983_v30 = vperm.slane %v1036_v26, 7  ;;  %v1222_v36 = vperm.slane %v1055_v33, 0  ;;  %v1336_v10 = vperm.slane %v1055_v33, 1 }
 0x2eb   : > { %v1450_v7 = vperm.slane %v1055_v33, 2  ;;  %v1564_v45 = vperm.slane %v1055_v33, 3  ;;  %v1678_v63 = vperm.slane %v1055_v33, 4  ;;  %v1792_v62 = vperm.slane %v1055_v33, 5 }
 0x2ec   : > { %v1906_v41 = vperm.slane %v1055_v33, 6  ;;  %v2020_v58 = vperm.slane %v1055_v33, 7  ;;  %v3865_v57 = vsel %vm1207_vm0, %v1178_v49, %v1214_v47  ;;  %v3868_v34 = vsel %vm1207_vm0, %v1299_v6, %v1328_v43  ;;  %v3888_v43 = vpop.xlane.xlu1 %1069 }
 0x2ed   : > { %4459 = vst [vmem:[#allocation34_spill] sm:$0xff] %v3868_v34  ;;  %v3871_v59 = vsel %vm1207_vm0, %v1413_v1, %v1442_v32  ;;  %v3874_v26 = vsel %vm1207_vm0, %v1527_v4, %v1556_v53  ;;  %v3877_v2 = vsel %vm1207_vm0, %v1641_v52, %v1670_v37  ;;  %v3880_v51 = vsel %vm1207_vm0, %v1755_v8, %v1784_v5 }
 0x2ee   : > { %4460 = vst [vmem:[#allocation35_spill] sm:$0xff] %v3871_v59  ;;  %v3883_v33 = vsel %vm1207_vm0, %v1869_v16, %v1898_v17  ;;  %v3886_v47 = vsel %vm1207_vm0, %v1983_v30, %v2012_v31  ;;  %v4466_v32 = vperm.slane %v3774_v21, 0  ;;  %v4467_v53 = vperm.slane %v3774_v21, 1 }
 0x2ef   : > { %4461 = vst [vmem:[#allocation36_spill] sm:$0xff] %v3874_v26  ;;  %v4468_v5 = vperm.slane %v3774_v21, 2  ;;  %v4469_v31 = vperm.slane %v3774_v21, 3  ;;  %v4470_v1 = vperm.slane %v3774_v21, 4  ;;  %v4471_v52 = vperm.slane %v3774_v21, 5 }
 0x2f0   : > { %4462 = vst [vmem:[#allocation37_spill] sm:$0xff] %v3877_v2  ;;  %v3893_v49 = vsel %vm1195_vm9, %v4466_v32, %v1222_v36  ;;  %v3898_v37 = vsel %vm1195_vm9, %v4467_v53, %v1336_v10  ;;  %v4472_v16 = vperm.slane %v3774_v21, 6  ;;  %v4473_v36 = vperm.slane %v3774_v21, 7 }
 0x2f1   : > { %4463 = vst [vmem:[#allocation38_spill] sm:$0xff] %v3880_v51  ;;  %v3903_v17 = vsel %vm1195_vm9, %v4468_v5, %v1450_v7  ;;  %v3908_v6 = vsel %vm1195_vm9, %v4469_v31, %v1564_v45  ;;  %v3913_v4 = vsel %vm1195_vm9, %v4470_v1, %v1678_v63  ;;  %v3918_v8 = vsel %vm1195_vm9, %v4471_v52, %v1792_v62  ;;  %v1082_v7 = vpop.xlane.xlu2 %1081 }
 0x2f2   : > { %4464 = vst [vmem:[#allocation39_spill] sm:$0xff] %v3883_v33  ;;  %v3923_v30 = vsel %vm1195_vm9, %v4472_v16, %v1906_v41  ;;  %v3928_v10 = vsel %vm1195_vm9, %v4473_v36, %v2020_v58  ;;  %v1231_v31 = vperm.slane %v1082_v7, 0  ;;  %v1345_v58 = vperm.slane %v1082_v7, 1 }
 0x2f3   : > { %4465 = vst [vmem:[#allocation40_spill] sm:$0xff] %v3886_v47  ;;  %v1459_v1 = vperm.slane %v1082_v7, 2  ;;  %v1573_v52 = vperm.slane %v1082_v7, 3  ;;  %v1687_v16 = vperm.slane %v1082_v7, 4  ;;  %v1801_v36 = vperm.slane %v1082_v7, 5  ;;  %v1085_v47 = vpop.xlane.xlu0 %1084 }
 0x2f4   : > { %v1915_v45 = vperm.slane %v1082_v7, 6  ;;  %v2029_v63 = vperm.slane %v1082_v7, 7  ;;  %v1230_v48 = vperm.slane %v1079_v40, 0  ;;  %v1344_v32 = vperm.slane %v1079_v40, 1  ;;  %v3946_v59 = vpop.xlane.xlu1 %1096 }
 0x2f5   : > { %v1458_v11 = vperm.slane %v1079_v40, 2  ;;  %v1572_v62 = vperm.slane %v1079_v40, 3  ;;  %v1686_v53 = vperm.slane %v1079_v40, 4  ;;  %v1800_v33 = vperm.slane %v1079_v40, 5  ;;  %4474 = vst [vmem:[#allocation41_spill] sm:$0xff] %v3946_v59 }
 0x2f6   : > { %v1914_v5 = vperm.slane %v1079_v40, 6  ;;  %v2028_v51 = vperm.slane %v1079_v40, 7  ;;  %v1261_v41 = vsel %vm1195_vm9, %v1231_v31, %v1230_v48  ;;  %v1375_v21 = vsel %vm1195_vm9, %v1345_v58, %v1344_v32 }
 0x2f7   : > { %v1489_v20 = vsel %vm1195_vm9, %v1459_v1, %v1458_v11  ;;  %v1603_v2 = vsel %vm1195_vm9, %v1573_v52, %v1572_v62  ;;  %v1717_v26 = vsel %vm1195_vm9, %v1687_v16, %v1686_v53  ;;  %v1831_v7 = vsel %vm1195_vm9, %v1801_v36, %v1800_v33 }
 0x2f8   : > { %v1945_v28 = vsel %vm1195_vm9, %v1915_v45, %v1914_v5  ;;  %v2059_v23 = vsel %vm1195_vm9, %v2029_v63, %v2028_v51  ;;  %v1232_v34 = vperm.slane %v1085_v47, 0  ;;  %v1346_v40 = vperm.slane %v1085_v47, 1 }
 0x2f9   : > { %v1460_v61 = vperm.slane %v1085_v47, 2  ;;  %v1574_v48 = vperm.slane %v1085_v47, 3  ;;  %v1688_v31 = vperm.slane %v1085_v47, 4  ;;  %v1802_v32 = vperm.slane %v1085_v47, 5  ;;  %v1064_v1 = vpop.xlane.xlu2 %1063 }
 0x2fa   : > { %v1916_v58 = vperm.slane %v1085_v47, 6  ;;  %v2030_v11 = vperm.slane %v1085_v47, 7  ;;  %v1262_v16 = vsel %vm1197_vm11, %v1232_v34, %v1261_v41  ;;  %v1376_v47 = vsel %vm1197_vm11, %v1346_v40, %v1375_v21 }
 0x2fb   : > { %v1490_v36 = vsel %vm1197_vm11, %v1460_v61, %v1489_v20  ;;  %v1604_v53 = vsel %vm1197_vm11, %v1574_v48, %v1603_v2  ;;  %v1718_v33 = vsel %vm1197_vm11, %v1688_v31, %v1717_v26  ;;  %v1832_v45 = vsel %vm1197_vm11, %v1802_v32, %v1831_v7  ;;  %v3972_v41 = vpop.xlane.xlu0 %1066 }
 0x2fc   : > { %v1946_v51 = vsel %vm1197_vm11, %v1916_v58, %v1945_v28  ;;  %v2060_v63 = vsel %vm1197_vm11, %v2030_v11, %v2059_v23  ;;  %v4475_v5 = vperm.slane %v3802_v50, 0  ;;  %v4476_v34 = vperm.slane %v3802_v50, 1 }
 0x2fd   : > { %v1225_v20 = vperm.slane %v1064_v1, 0  ;;  %v1339_v2 = vperm.slane %v1064_v1, 1  ;;  %v4477_v26 = vperm.slane %v3802_v50, 2  ;;  %v4478_v23 = vperm.slane %v3802_v50, 3 }
 0x2fe   : > { %v1255_v52 = vsel %vm1197_vm11, %v4475_v5, %v3893_v49  ;;  %v1369_v61 = vsel %vm1197_vm11, %v4476_v34, %v3898_v37  ;;  %v4479_v49 = vperm.slane %v3802_v50, 4  ;;  %v1453_v37 = vperm.slane %v1064_v1, 2 }
 0x2ff   : > { %v1483_v28 = vsel %vm1197_vm11, %v4477_v26, %v3903_v17  ;;  %v1597_v21 = vsel %vm1197_vm11, %v4478_v23, %v3908_v6  ;;  %v4480_v40 = vperm.slane %v3802_v50, 5  ;;  %v1567_v31 = vperm.slane %v1064_v1, 3 }
 0x300   : > { %v1711_v7 = vsel %vm1197_vm11, %v4479_v49, %v3913_v4  ;;  %v1681_v32 = vperm.slane %v1064_v1, 4  ;;  %v1795_v58 = vperm.slane %v1064_v1, 5  ;;  %v4481_v17 = vperm.slane %v3802_v50, 6 }
 0x301   : > { %v1825_v48 = vsel %vm1197_vm11, %v4480_v40, %v3918_v8  ;;  %v1909_v6 = vperm.slane %v1064_v1, 6  ;;  %v2023_v5 = vperm.slane %v1064_v1, 7  ;;  %v1226_v34 = vperm.slane %v3972_v41, 0 }
 0x302   : > { %v1939_v11 = vsel %vm1197_vm11, %v4481_v17, %v3923_v30  ;;  %v1256_v4 = vsel %vm1199_vm12, %v1225_v20, %v1255_v52  ;;  %v1370_v26 = vsel %vm1199_vm12, %v1339_v2, %v1369_v61  ;;  %v1340_v23 = vperm.slane %v3972_v41, 1  ;;  %v1091_v17 = vpop.xlane.xlu2 %1090 }
 0x303   : > { %v1454_v8 = vperm.slane %v3972_v41, 2  ;;  %v1484_v49 = vsel %vm1199_vm12, %v1453_v37, %v1483_v28  ;;  %v1568_v40 = vperm.slane %v3972_v41, 3  ;;  %v1682_v62 = vperm.slane %v3972_v41, 4 }
 0x304   : > { %v1796_v30 = vperm.slane %v3972_v41, 5  ;;  %v4482_v1 = vperm.slane %v3802_v50, 7  ;;  %v1598_v61 = vsel %vm1199_vm12, %v1567_v31, %v1597_v21  ;;  %v1712_v20 = vsel %vm1199_vm12, %v1681_v32, %v1711_v7 }
 0x305   : > { %v1826_v2 = vsel %vm1199_vm12, %v1795_v58, %v1825_v48  ;;  %v1940_v28 = vsel %vm1199_vm12, %v1909_v6, %v1939_v11  ;;  %v4013_v56 = vsel %vm1201_vm13, %v1226_v34, %v1256_v4  ;;  %v1910_v54 = vperm.slane %v3972_v41, 6 }
 0x306   : > { %v2053_v52 = vsel %vm1197_vm11, %v4482_v1, %v3928_v10  ;;  %v4017_v59 = vsel %vm1201_vm13, %v1340_v23, %v1370_v26  ;;  %v4020_v50 = vsel %vm1201_vm13, %v1454_v8, %v1484_v49  ;;  %v2024_v10 = vperm.slane %v3972_v41, 7 }
 0x307   : > { %v2054_v37 = vsel %vm1199_vm12, %v2023_v5, %v2053_v52  ;;  %v1234_v21 = vperm.slane %v1091_v17, 0  ;;  %v4024_v7 = vsel %vm1201_vm13, %v1568_v40, %v1598_v61  ;;  %v4027_v48 = vsel %vm1201_vm13, %v1682_v62, %v1712_v20 }
 0x308   : > { %v4030_v31 = vsel %vm1201_vm13, %v1796_v30, %v1826_v2  ;;  %v4483_v32 = vperm.slane %v3837_v19, 0  ;;  %v4484_v11 = vperm.slane %v3837_v19, 1  ;;  %v1348_v5 = vperm.slane %v1091_v17, 1 }
 0x309   : > { %v1462_v41 = vperm.slane %v1091_v17, 2  ;;  %v1576_v34 = vperm.slane %v1091_v17, 3  ;;  %v4485_v4 = vperm.slane %v3837_v19, 2  ;;  %v4486_v62 = vperm.slane %v3837_v19, 3 }
 0x30a   : > { %v1263_v58 = vsel %vm1199_vm12, %v4483_v32, %v1262_v16  ;;  %v1377_v6 = vsel %vm1199_vm12, %v4484_v11, %v1376_v47  ;;  %v4487_v8 = vperm.slane %v3837_v19, 4  ;;  %v4488_v16 = vperm.slane %v3837_v19, 5  ;;  %v1094_v47 = vpop.xlane.xlu0 %1093 }
 0x30b   : > { %v1491_v26 = vsel %vm1199_vm12, %v4485_v4, %v1490_v36  ;;  %v1605_v23 = vsel %vm1199_vm12, %v4486_v62, %v1604_v53  ;;  %v4489_v30 = vperm.slane %v3837_v19, 6  ;;  %v4490_v52 = vperm.slane %v3837_v19, 7 }
 0x30c   : > { %v1719_v49 = vsel %vm1199_vm12, %v4487_v8, %v1718_v33  ;;  %v1833_v40 = vsel %vm1199_vm12, %v4488_v16, %v1832_v45  ;;  %v1264_v61 = vsel %vm1201_vm13, %v1234_v21, %v1263_v58  ;;  %v1690_v53 = vperm.slane %v1091_v17, 4 }
 0x30d   : > { %v1947_v1 = vsel %vm1199_vm12, %v4489_v30, %v1946_v51  ;;  %v2061_v36 = vsel %vm1199_vm12, %v4490_v52, %v2060_v63  ;;  %v1804_v20 = vperm.slane %v1091_v17, 5  ;;  %v1918_v2 = vperm.slane %v1091_v17, 6 }
 0x30e   : > { %v2032_v32 = vperm.slane %v1091_v17, 7  ;;  %v4491_v33 = vperm.slane %v3550_v22, 0  ;;  %v1378_v45 = vsel %vm1201_vm13, %v1348_v5, %v1377_v6  ;;  %v1492_v4 = vsel %vm1201_vm13, %v1462_v41, %v1491_v26  ;;  %v4076_v26 = vpop.xlane.xlu2 %1072 }
 0x30f   : > { %v1606_v51 = vsel %vm1201_vm13, %v1576_v34, %v1605_v23  ;;  %v1235_v62 = vperm.slane %v1094_v47, 0  ;;  %v1349_v19 = vperm.slane %v1094_v47, 1  ;;  %v1463_v8 = vperm.slane %v1094_v47, 2 }
 0x310   : > { %v1104_v11 = vmul.f32 %v4491_v33, %v3567_v38  ;;  %v1577_v63 = vperm.slane %v1094_v47, 3  ;;  %v1720_v21 = vsel %vm1201_vm13, %v1690_v53, %v1719_v49  ;;  %v1691_v58 = vperm.slane %v1094_v47, 4 }
 0x311   : > { %v1805_v30 = vperm.slane %v1094_v47, 5  ;;  %v1919_v17 = vperm.slane %v1094_v47, 6  ;;  %v1834_v52 = vsel %vm1201_vm13, %v1804_v20, %v1833_v40  ;;  %v1948_v38 = vsel %vm1201_vm13, %v1918_v2, %v1947_v1 }
 0x312   : > { %v1127_v16 = vmul.f32 1.442695, %v1104_v11  ;;  %v2033_v33 = vperm.slane %v1094_v47, 7  ;;  %v4067_v6 = vsel %vm1201_vm13, %v1910_v54, %v1940_v28  ;;  %v4070_v5 = vsel %vm1201_vm13, %v2024_v10, %v2054_v37 }
 0x313   : > { %v2062_v41 = vsel %vm1201_vm13, %v2032_v32, %v2061_v36  ;;  %v4074_v34 = vsel %vm1203_vm14, %v1235_v62, %v1264_v61  ;;  %v4079_v23 = vsel %vm1203_vm14, %v1349_v19, %v1378_v45  ;;  %v4082_v49 = vsel %vm1203_vm14, %v1463_v8, %v1492_v4 }
 0x314   : > { %2666 = vpow2.f32 %v1127_v16  ;;  %v4085_v40 = vsel %vm1203_vm14, %v1577_v63, %v1606_v51  ;;  %v4492_v54 = vperm.slane %v3746_v15, 0  ;;  %v4092_v37 = vsel %vm1203_vm14, %v1691_v58, %v1720_v21 }
 0x315   : > { %v4095_v10 = vsel %vm1203_vm14, %v1805_v30, %v1834_v52  ;;  %v4098_v47 = vsel %vm1203_vm14, %v1919_v17, %v1948_v38  ;;  %v1162_v1 = vperm.slane %v3648_v13, 0  ;;  %v4102_v36 = vsel %vm1203_vm14, %v2033_v33, %v2062_v41 }
 0x316   : > { %v1208_v28 = vsel %vm1207_vm0, %v4492_v54, %v3823_v18  ;;  %v1228_v61 = vperm.slane %v4076_v26, 0  ;;  %v1342_v53 = vperm.slane %v4076_v26, 1  ;;  %2668 = vpow2.f32 %v3627_v35  ;;  %v4107_v18 = vpop.xlane.xlu0 %1075 }
 0x317   : > { %v1456_v20 = vperm.slane %v4076_v26, 2  ;;  %v1570_v2 = vperm.slane %v4076_v26, 3  ;;  %v1684_v32 = vperm.slane %v4076_v26, 4  ;;  %v1218_v11 = vmul.f32 %v1208_v28, %v1162_v1 }
 0x318   : > { %v1798_v4 = vperm.slane %v4076_v26, 5  ;;  %v1912_v51 = vperm.slane %v4076_v26, 6  ;;  %v2026_v62 = vperm.slane %v4076_v26, 7  ;;  %v1283_v35 = vperm.slane %v3648_v13, 1 }
 0x319   : > { %2670 = vpow2.f32 %v3639_v46  ;;  %v1229_v8 = vperm.slane %v4107_v18, 0  ;;  %v4493_v63 = vperm.slane %v3888_v43, 0  ;;  %v1397_v21 = vperm.slane %v3648_v13, 2 }
 0x31a   : > { %v2667_v45 = vpop.eup %2666  ;;  %2672 = vpow2.f32 %v3644_v55  ;;  %v4494_v30 = vperm.slane %v3746_v15, 1  ;;  %v1511_v46 = vperm.slane %v3648_v13, 3  ;;  %v1625_v52 = vperm.slane %v3648_v13, 4 }
 0x31b   : > { %v1160_v19 = vmul.f32 0.0, %v2667_v45  ;;  %v1258_v16 = vsel %vm1203_vm14, %v4493_v63, %v4013_v56  ;;  %2674 = vpow2.f32 %v3660_v60  ;;  %v1739_v55 = vperm.slane %v3648_v13, 5 }
 0x31c   : > { %v1259_v58 = vsel %vm1205_vm15, %v1228_v61, %v1258_v16  ;;  %v1322_v17 = vsel %vm1207_vm0, %v4494_v30, %v3826_v29  ;;  %v2669_v33 = vpop.eup %2668  ;;  %2676 = vpow2.f32 %v3665_v0  ;;  %v1853_v56 = vperm.slane %v3648_v13, 6 }
 0x31d   : > { %v1220_v38 = vadd.f32 %v1218_v11, %v1160_v19  ;;  %v1967_v41 = vperm.slane %v3648_v13, 7  ;;  %v1260_v54 = vsel %vm1207_vm0, %v1229_v8, %v1259_v58  ;;  %v1332_v60 = vmul.f32 %v1322_v17, %v1283_v35 }
 0x31e   : > { %v4495_v29 = vperm.slane %v3746_v15, 2  ;;  %2678 = vpow2.f32 %v3676_v24  ;;  %v1343_v0 = vperm.slane %v4107_v18, 1  ;;  %v4496_v11 = vperm.slane %v3888_v43, 1 }
 0x31f   : > { %v1281_v28 = vmul.f32 %v2669_v33, %v1220_v38  ;;  %v1457_v19 = vperm.slane %v4107_v18, 2  ;;  %v2671_v8 = vpop.eup %2670  ;;  %2680 = vpow2.f32 %v3686_v9  ;;  %v4499_v9 = vperm.slane %v3550_v22, 0 }
 0x320   : > { %v1436_v61 = vsel %vm1207_vm0, %v4495_v29, %v3829_v27  ;;  %v1372_v45 = vsel %vm1203_vm14, %v4496_v11, %v4017_v59  ;;  %v4497_v27 = vperm.slane %v3888_v43, 2  ;;  %v2673_v58 = vpop.eup %2672  ;;  %v4498_v59 = vperm.slane %v3746_v15, 3 }
 0x321   : > { %v1334_v63 = vadd.f32 %v1332_v60, %v1281_v28  ;;  %v1373_v16 = vsel %vm1205_vm15, %v1342_v53, %v1372_v45  ;;  %v1446_v30 = vmul.f32 %v1436_v61, %v1397_v21  ;;  %v1105_v53 = vmul.f32 %v4499_v9, %v3573_v44  ;;  %v2675_v28 = vpop.eup %2674 }
 0x322   : > { %v1486_v24 = vsel %vm1203_vm14, %v4497_v27, %v4020_v50  ;;  %v1550_v33 = vsel %vm1207_vm0, %v4498_v59, %v3832_v12  ;;  %v1571_v29 = vperm.slane %v4107_v18, 3  ;;  %v4500_v50 = vperm.slane %v3888_v43, 3  ;;  %v2677_v45 = vpop.eup %2676 }
 0x323   : > { %v1487_v17 = vsel %vm1205_vm15, %v1456_v20, %v1486_v24  ;;  %v1395_v60 = vmul.f32 %v2671_v8, %v1334_v63  ;;  %v4501_v20 = vperm.slane %v3746_v15, 4  ;;  %v1685_v22 = vperm.slane %v4107_v18, 4 }
 0x324   : > { %v1600_v61 = vsel %vm1203_vm14, %v4500_v50, %v4024_v7  ;;  %v4502_v44 = vperm.slane %v3888_v43, 4  ;;  %v1129_v27 = vmul.f32 1.442695, %v1105_v53  ;;  %v4503_v7 = vperm.slane %v3746_v15, 5  ;;  %v2679_v50 = vpop.eup %2678 }
 0x325   : > { %v1664_v11 = vsel %vm1207_vm0, %v4501_v20, %v3835_v3  ;;  %v1601_v12 = vsel %vm1205_vm15, %v1570_v2, %v1600_v61  ;;  %v4183_v24 = vadd.f32 %v1446_v30, %v1395_v60  ;;  %v1799_v3 = vperm.slane %v4107_v18, 5  ;;  %v4197_v53 = vpop.eup %2680 }
 0x326   : > { %v1714_v8 = vsel %vm1203_vm14, %v4502_v44, %v4027_v48  ;;  %v1778_v59 = vsel %vm1207_vm0, %v4503_v7, %v3840_v14  ;;  %v4504_v2 = vperm.slane %v3888_v43, 5  ;;  %v1374_v61 = vsel %vm1207_vm0, %v1343_v0, %v1373_v16  ;;  %v4243_v7 = vpop.xlane.xlu2 %1099 }
 0x327   : > { %v1715_v48 = vsel %vm1205_vm15, %v1684_v32, %v1714_v8  ;;  %2682 = vpow2.f32 %v1129_v27  ;;  %v1488_v60 = vsel %vm1207_vm0, %v1457_v19, %v1487_v17  ;;  %v1509_v14 = vmul.f32 %v2673_v58, %v4183_v24 }
 0x328   : > { %v1828_v9 = vsel %vm1203_vm14, %v4504_v2, %v4030_v31  ;;  %v1560_v20 = vmul.f32 %v1550_v33, %v1511_v46  ;;  %v4505_v31 = vperm.slane %v3746_v15, 6  ;;  %v1270_v0 = vmul.f32 %v1260_v54, %v1220_v38  ;;  %v2485_v2 = vld [vmem:[#allocation17 + $0x18] sm:$0xff] }
 0x329   : > { %v1829_v30 = vsel %vm1205_vm15, %v1798_v4, %v1828_v9  ;;  %v4208_v32 = vsel %vm1207_vm0, %v1571_v29, %v1601_v12  ;;  %v1674_v4 = vmul.f32 %v1664_v11, %v1625_v52  ;;  %v1788_v19 = vmul.f32 %v1778_v59, %v1739_v55  ;;  %v4511_v9 = vld [vmem:[#allocation28_spill] sm:$0xff]  ;;  %2161 = vmatpush.bf16.msrb.mxu0 %v2485_v2 }
 0x32a   : > { %v1892_v44 = vsel %vm1207_vm0, %v4505_v31, %v3843_v25  ;;  %v4214_v16 = vadd.f32 %v1560_v20, %v1509_v14  ;;  %v4217_v58 = vsel %vm1207_vm0, %v1685_v22, %v1715_v48  ;;  %v4220_v17 = vsel %vm1207_vm0, %v1799_v3, %v1829_v30  ;;  %v4512_v48 = vld [vmem:[#allocation29_spill] sm:$0xff] }
 0x32b   : > { %v1913_v25 = vperm.slane %v4107_v18, 6  ;;  %v1902_v38 = vmul.f32 %v1892_v44, %v1853_v56  ;;  %v4506_v54 = vperm.slane %v3888_v43, 6  ;;  %v4507_v29 = vperm.slane %v3746_v15, 7  ;;  %v4513_v44 = vld [vmem:[#allocation30_spill] sm:$0xff] }
 0x32c   : > { %2684 = vpow2.f32 %v3637_v42  ;;  %v1623_v12 = vmul.f32 %v2675_v28, %v4214_v16  ;;  %v2027_v22 = vperm.slane %v4107_v18, 7  ;;  %v4508_v8 = vperm.slane %v3888_v43, 7 }
 0x32d   : > { %v1942_v33 = vsel %vm1203_vm14, %v4506_v54, %v4067_v6  ;;  %v2006_v11 = vsel %vm1207_vm0, %v4507_v29, %v3846_v39  ;;  %v1219_v6 = vmul.f32 %v3865_v57, %v1162_v1  ;;  %v2683_v15 = vpop.eup %2682  ;;  %v1272_v39 = vsel %vm764_vm8, %v1270_v0, 0.0  ;;  %v4509_v57 = vld [vmem:[#allocation41_spill] sm:$0xff]  ;;  %v4514_v0 = vld [vmem:[#allocation34_spill] sm:$0xff] }
 0x32e   : > { %v2056_v27 = vsel %vm1203_vm14, %v4508_v8, %v4070_v5  ;;  %v1384_v59 = vmul.f32 %v1374_v61, %v1334_v63  ;;  %v1943_v42 = vsel %vm1205_vm15, %v1912_v51, %v1942_v33  ;;  %v1237_v18 = vperm.slane %v4243_v7, 0 }
 0x32f   : > { %v4250_v28 = vadd.f32 %v1674_v4, %v1623_v12  ;;  %v2057_v43 = vsel %vm1205_vm15, %v2026_v62, %v2056_v27  ;;  %v1161_v5 = vmul.f32 0.0, %v2683_v15  ;;  %v4510_v1 = vperm.slane %v4509_v57, 0 }
 0x330   : > { %v2016_v63 = vmul.f32 %v2006_v11, %v1967_v41  ;;  %2686 = vpow2.f32 %v4511_v9  ;;  %v1351_v61 = vperm.slane %v4243_v7, 1  ;;  %v4266_v62 = vsel %vm1207_vm0, %v1913_v25, %v1943_v42  ;;  %v4516_v11 = vld [vmem:[#allocation35_spill] sm:$0xff] }
 0x331   : > { %v1266_v3 = vsel %vm1205_vm15, %v4510_v1, %v4074_v34  ;;  %v1737_v26 = vmul.f32 %v2677_v45, %v4250_v28  ;;  %2688 = vpow2.f32 %v4512_v48  ;;  %v1221_v30 = vadd.f32 %v1219_v6, %v1161_v5  ;;  %v2484_v34 = vld [vmem:[#allocation17 + $0x10] sm:$0xff] }
 0x332   : > { %v1267_v51 = vsel %vm1207_vm0, %v1237_v18, %v1266_v3  ;;  %v2685_v14 = vpop.eup %2684  ;;  %v1386_v20 = vsel %vm764_vm8, %v1384_v59, 0.0  ;;  %v4271_v31 = vsel %vm1207_vm0, %v2027_v22, %v2057_v43  ;;  %2690 = vpow2.f32 %v4513_v44  ;;  %v4518_v6 = vld [vmem:[#allocation31_spill] sm:$0xff]  ;;  %2162 = vmatpush.bf16.msrb.mxu0 %v2484_v34  ;;  %v2483_v59 = vld [vmem:[#allocation17 + $0x8] sm:$0xff]  ;;  %v4519_v18 = vld [vmem:[#allocation32_spill] sm:$0xff] }
 0x333   : > { %v1333_v45 = vmul.f32 %v4514_v0, %v1283_v35  ;;  %v4277_v4 = vadd.f32 %v1788_v19, %v1737_v26  ;;  %v1282_v25 = vmul.f32 %v2685_v14, %v1221_v30  ;;  %v4515_v54 = vperm.slane %v4509_v57, 1  ;;  %v2482_v14 = vld [vmem:[#allocation17] sm:$0xff] }
 0x334   : > { %v1271_v29 = vmul.f32 %v1267_v51, %v1221_v30  ;;  %v1447_v12 = vmul.f32 %v4516_v11, %v1397_v21  ;;  %v4517_v22 = vperm.slane %v4509_v57, 2  ;;  %v1465_v19 = vperm.slane %v4243_v7, 2  ;;  %v4524_v44 = vld [vmem:[#allocation33_spill] sm:$0xff] }
 0x335   : > { %v1380_v33 = vsel %vm1205_vm15, %v4515_v54, %v4079_v23  ;;  %v1851_v27 = vmul.f32 %v2679_v50, %v4277_v4  ;;  %2692 = vpow2.f32 %v4518_v6  ;;  %v1335_v15 = vadd.f32 %v1333_v45, %v1282_v25 }
 0x336   : > { %v1494_v8 = vsel %vm1205_vm15, %v4517_v22, %v4082_v49  ;;  %v1381_v35 = vsel %vm1207_vm0, %v1351_v61, %v1380_v33  ;;  %v1273_v23 = vsel %vm764_vm8, %v1271_v29, 0.0  ;;  %v2687_v42 = vpop.eup %2686  ;;  %v1498_v21 = vmul.f32 %v1488_v60, %v4183_v24  ;;  %v4520_v49 = vld [vmem:[#allocation36_spill] sm:$0xff]  ;;  %v4522_v24 = vld [vmem:[#allocation37_spill] sm:$0xff]  ;;  %2163 = vmatpush.bf16.msrb.mxu0 %v2483_v59  ;;  %v4525_v33 = vld [vmem:[#allocation38_spill] sm:$0xff] }
 0x337   : > { %2694 = vpow2.f32 %v4519_v18  ;;  %v1561_v43 = vmul.f32 %v4520_v49, %v1511_v46  ;;  %v1274_v5 = vadd.f32 %v1273_v23, %v1272_v39  ;;  %v2689_v1 = vpop.eup %2688  ;;  %v4300_v3 = vadd.f32 %v1902_v38, %v1851_v27 }
 0x338   : > { %v1396_v50 = vmul.f32 %v2687_v42, %v1335_v15  ;;  %v4521_v2 = vperm.slane %v4509_v57, 3  ;;  %v1385_v51 = vmul.f32 %v1381_v35, %v1335_v15  ;;  %v2691_v61 = vpop.eup %2690  ;;  %v1675_v60 = vmul.f32 %v4522_v24, %v1625_v52 }
 0x339   : > { %v1275_v26 = vrot.slane %v1274_v5, 4  ;;  %v1495_v48 = vsel %vm1207_vm0, %v1465_v19, %v1494_v8  ;;  %v1579_v46 = vperm.slane %v4243_v7, 3  ;;  %v1965_v38 = vmul.f32 %v4197_v53, %v4300_v3 }
 0x33a   : > { %v1608_v9 = vsel %vm1205_vm15, %v4521_v2, %v4085_v40  ;;  %v1449_v39 = vadd.f32 %v1447_v12, %v1396_v50  ;;  %v4523_v30 = vperm.slane %v4509_v57, 4  ;;  %v1387_v34 = vsel %vm764_vm8, %v1385_v51, 0.0  ;;  %2164 = vmatpush.bf16.msrb.mxu0 %v2482_v14 }
 0x33b   : > { %v1500_v52 = vsel %vm764_vm8, %v1498_v21, 0.0  ;;  %2696 = vpow2.f32 %v4524_v44  ;;  %v1276_v0 = vadd.f32 %v1275_v26, %v1274_v5  ;;  %v1388_v45 = vadd.f32 %v1387_v34, %v1386_v20  ;;  %v2693_v25 = vpop.eup %2692 }
 0x33c   : > { %v1722_v40 = vsel %vm1205_vm15, %v4523_v30, %v4092_v37  ;;  %v4320_v54 = vadd.f32 %v2016_v63, %v1965_v38  ;;  %v1510_v53 = vmul.f32 %v2689_v1, %v1449_v39  ;;  %v1789_v29 = vmul.f32 %v4525_v33, %v1739_v55  ;;  %v4527_v55 = vld [vmem:[#allocation39_spill] sm:$0xff] }
 0x33d   : > { %v1499_v11 = vmul.f32 %v1495_v48, %v1449_v39  ;;  %v2695_v37 = vpop.eup %2694  ;;  %v1277_v12 = vrot.slane %v1276_v0, 2  ;;  %v1389_v22 = vrot.slane %v1388_v45, 4  ;;  %v1609_v8 = vsel %vm1207_vm0, %v1579_v46, %v1608_v9 }
 0x33e   : > { %v1693_v35 = vperm.slane %v4243_v7, 4  ;;  %v1612_v19 = vmul.f32 %v4208_v32, %v4214_v16  ;;  %v1563_v20 = vadd.f32 %v1561_v43, %v1510_v53  ;;  %v4526_v63 = vperm.slane %v4509_v57, 5 }
 0x33f   : > { %v1501_v6 = vsel %vm764_vm8, %v1499_v11, 0.0  ;;  %v1903_v15 = vmul.f32 %v4527_v55, %v1853_v56  ;;  %v1278_v23 = vadd.f32 %v1277_v12, %v1276_v0  ;;  %v1390_v59 = vadd.f32 %v1389_v22, %v1388_v45 }
 0x340   : > { %v1836_v27 = vsel %vm1205_vm15, %v4526_v63, %v4095_v10  ;;  %v1502_v42 = vadd.f32 %v1501_v6, %v1500_v52  ;;  %v1624_v21 = vmul.f32 %v2691_v61, %v1563_v20  ;;  %v4528_v32 = vperm.slane %v4509_v57, 6 }
 0x341   : > { %v1613_v18 = vmul.f32 %v1609_v8, %v1563_v20  ;;  %v1807_v49 = vperm.slane %v4243_v7, 5  ;;  %v2697_v10 = vpop.eup %2696  ;;  %v1279_v43 = vrot.slane %v1278_v23, 1  ;;  %v1391_v5 = vrot.slane %v1390_v59, 2 }
 0x342   : > { %v1950_v16 = vsel %vm1205_vm15, %v4528_v32, %v4098_v47  ;;  %v1503_v1 = vrot.slane %v1502_v42, 4  ;;  %v1723_v50 = vsel %vm1207_vm0, %v1693_v35, %v1722_v40  ;;  %v1614_v56 = vsel %vm764_vm8, %v1612_v19, 0.0 }
 0x343   : > { %v1726_v2 = vmul.f32 %v4217_v58, %v4250_v28  ;;  %v1677_v9 = vadd.f32 %v1675_v60, %v1624_v21  ;;  %v1615_v51 = vsel %vm764_vm8, %v1613_v18, 0.0  ;;  %v4529_v47 = vperm.slane %v4509_v57, 7 }
 0x344   : > { %v1392_v24 = vadd.f32 %v1391_v5, %v1390_v59  ;;  %v1504_v26 = vadd.f32 %v1503_v1, %v1502_v42  ;;  %v1616_v48 = vadd.f32 %v1615_v51, %v1614_v56  ;;  %v1837_v39 = vsel %vm1207_vm0, %v1807_v49, %v1836_v27 }
 0x345   : > { %v2064_v61 = vsel %vm1205_vm15, %v4529_v47, %v4102_v36  ;;  %v1738_v46 = vmul.f32 %v2693_v25, %v1677_v9  ;;  %v1727_v38 = vmul.f32 %v1723_v50, %v1677_v9  ;;  %v1921_v30 = vperm.slane %v4243_v7, 6 }
 0x346   : > { %v1393_v40 = vrot.slane %v1392_v24, 1  ;;  %v1505_v34 = vrot.slane %v1504_v26, 2  ;;  %v1617_v58 = vrot.slane %v1616_v48, 4  ;;  %v1280_v28 = vadd.f32 %v1279_v43, %v1278_v23 }
 0x347   : > { %v1728_v60 = vsel %vm764_vm8, %v1726_v2, 0.0  ;;  %v1840_v57 = vmul.f32 %v4220_v17, %v4277_v4  ;;  %v1791_v14 = vadd.f32 %v1789_v29, %v1738_v46  ;;  %v1729_v36 = vsel %vm764_vm8, %v1727_v38, 0.0 }
 0x348   : > { %v1506_v52 = vadd.f32 %v1505_v34, %v1504_v26  ;;  %v1618_v44 = vadd.f32 %v1617_v58, %v1616_v48  ;;  %v1730_v0 = vadd.f32 %v1729_v36, %v1728_v60  ;;  %v1394_v45 = vadd.f32 %v1393_v40, %v1392_v24  ;;  %v2643_v60 = vld [vmem:[#allocation16] ss:$0 sm:$0xff] }
 0x349   : > { %v1852_v25 = vmul.f32 %v2695_v37, %v1791_v14  ;;  %v1841_v53 = vmul.f32 %v1837_v39, %v1791_v14  ;;  %v1951_v33 = vsel %vm1207_vm0, %v1921_v30, %v1950_v16  ;;  %v2035_v11 = vperm.slane %v4243_v7, 7  ;;  %v4530_v7 = vld [vmem:[#allocation40_spill] sm:$0xff] }
 0x34a   : > { %v1619_v12 = vrot.slane %v1618_v44, 2  ;;  %v1731_v22 = vrot.slane %v1730_v0, 4  ;;  %v1507_v8 = vrot.slane %v1506_v52, 1  ;;  %v2079_v35 = vsel %vm639_vm1, %v1280_v28, %v1394_v45 }
 0x34b   : > { %v1842_v17 = vsel %vm764_vm8, %v1840_v57, 0.0  ;;  %v1954_v4 = vmul.f32 %v4266_v62, %v4300_v3  ;;  %v1905_v29 = vadd.f32 %v1903_v15, %v1852_v25  ;;  %v1843_v19 = vsel %vm764_vm8, %v1841_v53, 0.0  ;;  %v2118_v25 = vpop.permute.xlu1 %2117 }
 0x34c   : > { %v1732_v20 = vadd.f32 %v1731_v22, %v1730_v0  ;;  %v1844_v37 = vadd.f32 %v1843_v19, %v1842_v17  ;;  %v1508_v63 = vadd.f32 %v1507_v8, %v1506_v52  ;;  %v1620_v27 = vadd.f32 %v1619_v12, %v1618_v44  ;;  %v4531_v52 = vld [vmem:[#allocation27_spill] sm:$0xff] }
 0x34d   : > { %v1966_v6 = vmul.f32 %v2697_v10, %v1905_v29  ;;  %v2017_v55 = vmul.f32 %v4530_v7, %v1967_v41  ;;  %v1955_v23 = vmul.f32 %v1951_v33, %v1905_v29  ;;  %v2065_v59 = vsel %vm1207_vm0, %v2035_v11, %v2064_v61 }
 0x34e   : > { %v1621_v42 = vrot.slane %v1620_v27, 1  ;;  %v1733_v21 = vrot.slane %v1732_v20, 2  ;;  %v1845_v32 = vrot.slane %v1844_v37, 4  ;;  %v2080_v62 = vsel %vm646_vm2, %v2079_v35, %v1508_v63 }
 0x34f   : > { %v1956_v3 = vsel %vm764_vm8, %v1954_v4, 0.0  ;;  %v2068_v15 = vmul.f32 %v4271_v31, %v4320_v54  ;;  %v2019_v16 = vadd.f32 %v2017_v55, %v1966_v6  ;;  %v1957_v18 = vsel %vm764_vm8, %v1955_v23, 0.0 }
 0x350   : > { %v1622_v49 = vadd.f32 %v1621_v42, %v1620_v27  ;;  %v1734_v13 = vadd.f32 %v1733_v21, %v1732_v20  ;;  %v1846_v10 = vadd.f32 %v1845_v32, %v1844_v37  ;;  %v1958_v41 = vadd.f32 %v1957_v18, %v1956_v3 }
 0x351   : > { %v2069_v43 = vmul.f32 %v2065_v59, %v2019_v16  ;;  %v2070_v2 = vsel %vm764_vm8, %v2068_v15, 0.0  ;;  %vm2082_vm1 = vcmask 1043456   ;;  %vm2084_vm2 = vcmask 1044480  }
 0x352   : > { %v1735_v5 = vrot.slane %v1734_v13, 1  ;;  %v1847_v1 = vrot.slane %v1846_v10, 2  ;;  %v1959_v50 = vrot.slane %v1958_v41, 4  ;;  %v2081_v56 = vsel %vm653_vm3, %v2080_v62, %v1622_v49 }
 0x353   : > { %v2071_v9 = vsel %vm764_vm8, %v2069_v43, 0.0  ;;  %vm2086_vm3 = vcmask 1045504   ;;  %v2094_v44 = vmul.f32 %v2643_v60, %v4531_v52 }
 0x354   : > { %v1736_v51 = vadd.f32 %v1735_v5, %v1734_v13  ;;  %v1848_v31 = vadd.f32 %v1847_v1, %v1846_v10  ;;  %v1960_v54 = vadd.f32 %v1959_v50, %v1958_v41  ;;  %v2072_v47 = vadd.f32 %v2071_v9, %v2070_v2 }
 0x356   : > { %v1849_v61 = vrot.slane %v1848_v31, 1  ;;  %v1961_v24 = vrot.slane %v1960_v54, 2  ;;  %v2073_v26 = vrot.slane %v2072_v47, 4  ;;  %v2083_v48 = vsel %vm2082_vm1, %v2081_v56, %v1736_v51 }
 0x358   : > { %v1850_v46 = vadd.f32 %v1849_v61, %v1848_v31  ;;  %v1962_v38 = vadd.f32 %v1961_v24, %v1960_v54  ;;  %v2074_v39 = vadd.f32 %v2073_v26, %v2072_v47 }
 0x35a   : > { %v1963_v30 = vrot.slane %v1962_v38, 1  ;;  %v2075_v40 = vrot.slane %v2074_v39, 2  ;;  %v2085_v34 = vsel %vm2084_vm2, %v2083_v48, %v1850_v46 }
 0x35c   : > { %v1964_v58 = vadd.f32 %v1963_v30, %v1962_v38  ;;  %v2076_v28 = vadd.f32 %v2075_v40, %v2074_v39 }
 0x35e   : > { %v2077_v57 = vrot.slane %v2076_v28, 1  ;;  %v2087_v14 = vsel %vm2086_vm3, %v2085_v34, %v1964_v58 }
 0x360   : > { %v2078_v36 = vadd.f32 %v2077_v57, %v2076_v28 }
 0x362   : > { %v2089_v0 = vsel %vm2088_vm4, %v2087_v14, %v2078_v36 }
 0x363   : > { %v2095_v45 = vadd.f32 %v2094_v44, %v2089_v0 }
 0x365   : > { %v2120_v53 = vmul.f32 %v2118_v25, %v2095_v45 }
 0x367   : > { %v2121_v33 = vpack.c.bf16 %v2120_v53, %v2120_v53 }
 0x369   : > { %2463 = vmatmul.msk.bf16.vlgmr.msrb.gmra.mxu0 %vm764_vm8, %v2121_v33 }
 0x3e6   : > { %v2166_v11 = vpop.f32.mrf.mxu0 }
 0x3e7   : > { %2170 = vst [vmem:[%s596_s6] sm:$0xff] %v2166_v11 }
 0x3e8   : > { %3025 = shalt.err (!%p3022_p9)
}
 0x3e9   : > { %2524 = dma.vmem_to_hbm [thread:$0]  (%p3289_p13), %s2185_s16, 128, %s2187_s22, %s2172_s8  }
 0x3ee   : > { %v2168_v12 = vpop.f32.mrf.mxu0 }
 0x3ef PF: > { %s2198_s17 = sand.u32 1, %s3072_s25   ;;  %p4533_p10 = scmp.ge.s32.totalorder %s3084_s28, 2 }
 0x3f0   : > { %s2199_s5 = scalar_lea.sflag [#allocation4], %s2198_s17 }
 0x3f1   : > { %p2559_p11 = pnand %p4533_p10, %p3294_p4 }
 0x3f3   : > { %p2560_p0 = pneg %p2559_p11 }
 0x3f5   : > { %3067 = dma.done.wait (%p2560_p0), %s2199_s5, 128  }
 0x3f6   : > { %3069 = vsyncadd (%p2560_p0), %s2199_s5, 4294967168  ;;  %p31_p2 = scmp.ge.s32.totalorder %s3269_s21, 4   ;;  %s4534_s25 = smov %s3076_s26 }
 0x3f7   : > { %s4535_s26 = smov %s3080_s27  ;;  %s4536_s27 = smov %s3281_s19 }
 0x3f8   : > { %s4537_s28 = smov %s3269_s21  ;;  %33 = sbr.rel (!%p31_p2) target bundleno = 18 (0x12), region = 153 }
 0x3fd   :  { %2205 = vsyncpa [#allocation3], 1 }
 0x3fe   :  { %2207 = vsyncpa [#allocation3 + $0x1], 1 }
 0x3ff   :  { %2208 = vsyncpa [#allocation6], 1 }
 0x400   :  { %2209 = vsyncpa [#allocation9], 1 }
 0x401   :  { %2210 = vsyncpa [#allocation12], 1 }
 0x402   :  { %2211 = vsyncpa [#allocation15], 1 }
 0x403   :  { %2212 = vsyncpa [#allocation18], 1 }
 0x404   :  { %2213 = vsyncpa [#allocation4], 1 }
 0x405   :  { %2215 = vsyncpa [#allocation4 + $0x1], 1 }

</bundles_post_ra>
